<compile_context>
chip_gen: v7x
topology: tpu7x:2x2x1
jax: 0.10.0
libtpu: 0.0.40
codegen_flags: <defaults>
</compile_context>

<pallas_src>
import functools

import jax
import jax.numpy as jnp
from jax import lax
from jax.experimental import pallas as pl
from jax.experimental.pallas import tpu as pltpu


def _rnn_recurrence_kernel(xpb_ref,    # (T+1, B, 2H) time-major driving terms
                           wblk_ref,   # (2H, 2H)     fused block weight
                           out_ref):   # (T,   B, 2H) per-step fused states
    tp1 = xpb_ref.shape[0]

    # Load the fused weight once, outside the recurrence.
    wblk = wblk_ref[...]

    # Step 0: previous fused state is zero, so s_0 = tanh(0 @ W + xpb[0]).
    # xpb[0] = [xp_0, 0]  ->  s_0 = [h1_0, 0]  (tanh(0) = 0 encodes h2_{-1}=0).
    s0 = jnp.tanh(xpb_ref[0])

    def step(i, s):
        # s = [h1_{i-1}, h2_{i-2}]  ->  s_new = [h1_i, h2_{i-1}]
        s_new = jnp.tanh(
            jnp.dot(s, wblk, preferred_element_type=jnp.float32) + xpb_ref[i])
        # Store is off the carry: it hides under the next step's matmul.
        out_ref[i - 1] = s_new
        return s_new

    # T is static and small -> full unroll so the scheduler sees across steps.
    lax.fori_loop(1, tp1, step, s0, unroll=True)


@functools.partial(jax.jit, static_argnames=("num_classes",))
def rnn_forward(x, params, num_classes):
    """x: (B, T, D) float32 (batch_first, like the PyTorch module)."""
    del num_classes  # implied by fc_w
    B, T, D = x.shape
    (w_ih0, w_hh0, b_ih0, b_hh0,
     w_ih1, w_hh1, b_ih1, b_hh1,
     fc_w, fc_b) = params
    H = w_hh0.shape[0]

    # ---------- hoisted glue (one-shot XLA ops, off the serial chain) -------
    # Layer-0 input projection: x @ Wih0^T + (b_ih0 + b_hh0), all T at once.
    b0 = (b_ih0 + b_hh0).reshape(1, H)
    xp = (x.reshape(B * T, D) @ w_ih0.T + b0).reshape(B, T, H)
    xp_tm = jnp.transpose(xp, (1, 0, 2))                         # (T, B, H)

    # Fused driving term xpb[i] = [xp_i, b1] with the boundary conditions
    # folded in:  xpb[0] h2-half = 0 (h2_{-1} = 0),  xpb[T] h1-half = 0
    # (extra epilogue step only exists to produce h2_{T-1}).
    b1 = (b_ih1 + b_hh1).reshape(1, 1, H)
    xp_ext = jnp.concatenate(
        [xp_tm, jnp.zeros((1, B, H), jnp.float32)], axis=0)      # (T+1, B, H)
    b1_ext = jnp.concatenate(
        [jnp.zeros((1, B, H), jnp.float32),
         jnp.broadcast_to(b1, (T, B, H))], axis=0)               # (T+1, B, H)
    xpb = jnp.concatenate([xp_ext, b1_ext], axis=-1)             # (T+1, B, 2H)

    # Fused block weight:  [h1, h2] @ W_block = [h1@Whh0^T, h1@Wih1^T + h2@Whh1^T]
    zeros_hh = jnp.zeros((H, H), jnp.float32)
    w_block = jnp.concatenate(
        [jnp.concatenate([w_hh0.T, w_ih1.T], axis=1),
         jnp.concatenate([zeros_hh, w_hh1.T], axis=1)], axis=0)  # (2H, 2H)

    # ---------- Pallas kernel: the 28-step serial recurrence ----------------
    vmem = pl.BlockSpec(memory_space=pltpu.MemorySpace.VMEM)
    seq = pl.pallas_call(
        _rnn_recurrence_kernel,
        out_shape=jax.ShapeDtypeStruct((T, B, 2 * H), jnp.float32),
        in_specs=[vmem, vmem],
        out_specs=vmem,
    )(xpb, w_block)

    # ---------- hoisted fc: one (B, T*H) @ (T*H, C) matmul in XLA -----------
    h2_seq = seq[:, :, H:]                                       # (T, B, H)
    h2_flat = jnp.transpose(h2_seq, (1, 0, 2)).reshape(B, T * H)
    return h2_flat @ fc_w.T + fc_b


def init_params(key, input_size, hidden_size, num_classes, seq_len):
    """Deterministic init mimicking PyTorch's U(-1/sqrt(H), 1/sqrt(H))."""
    H, D, C, T = hidden_size, input_size, num_classes, seq_len
    bound_rnn = 1.0 / jnp.sqrt(H)
    bound_fc = 1.0 / jnp.sqrt(H * T)
    ks = jax.random.split(key, 10)
    u = lambda k, shape, b: jax.random.uniform(k, shape, jnp.float32, -b, b)
    w_ih0 = u(ks[0], (H, D), bound_rnn)
    w_hh0 = u(ks[1], (H, H), bound_rnn)
    b_ih0 = u(ks[2], (H,), bound_rnn)
    b_hh0 = u(ks[3], (H,), bound_rnn)
    w_ih1 = u(ks[4], (H, H), bound_rnn)
    w_hh1 = u(ks[5], (H, H), bound_rnn)
    b_ih1 = u(ks[6], (H,), bound_rnn)
    b_hh1 = u(ks[7], (H,), bound_rnn)
    fc_w = u(ks[8], (C, H * T), bound_fc)
    fc_b = u(ks[9], (C,), bound_fc)
    return (w_ih0, w_hh0, b_ih0, b_hh0,
            w_ih1, w_hh1, b_ih1, b_hh1,
            fc_w, fc_b)


def reference_forward(x, params, num_classes):
    """Pure-JAX reference replicating nn.RNN(tanh, 2 layers) + fc."""
    del num_classes
    (w_ih0, w_hh0, b_ih0, b_hh0,
     w_ih1, w_hh1, b_ih1, b_hh1,
     fc_w, fc_b) = params
    B, T, D = x.shape
    H = w_hh0.shape[0]
    h1 = jnp.zeros((B, H), jnp.float32)
    h2 = jnp.zeros((B, H), jnp.float32)
    outs = []
    for t in range(T):
        xt = x[:, t, :]
        h1 = jnp.tanh(xt @ w_ih0.T + b_ih0 + h1 @ w_hh0.T + b_hh0)
        h2 = jnp.tanh(h1 @ w_ih1.T + b_ih1 + h2 @ w_hh1.T + b_hh1)
        outs.append(h2)
    out = jnp.stack(outs, axis=1).reshape(B, T * H)
    return out @ fc_w.T + fc_b


if __name__ == "__main__":
    # Module implies seq_len == 28 (fc expects hidden_size * 28 features).
    batch, seq_len, input_size = 2, 28, 16
    hidden_size, num_layers, num_classes = 32, 2, 10

    key = jax.random.PRNGKey(0)
    k_x, k_p = jax.random.split(key)
    x = jax.random.normal(k_x, (batch, seq_len, input_size), jnp.float32)
    params = init_params(k_p, input_size, hidden_size, num_classes, seq_len)

    out = rnn_forward(x, params, num_classes)
    out = jax.block_until_ready(out)

    ref = reference_forward(x, params, num_classes)
    assert out.shape == (batch, num_classes)
    assert jnp.allclose(out, ref, atol=1e-4, rtol=1e-4), "mismatch vs reference"
    print("KERNEL_OK")
</pallas_src>

<mosaic_0001>
module attributes {stable_mosaic.version = 11 : i64} {
  func.func @_rnn_recurrence_kernel(%arg0: memref<29x2x64xf32, #tpu.memory_space<vmem>>, %arg1: memref<64x64xf32, #tpu.memory_space<vmem>>, %arg2: memref<28x2x64xf32, #tpu.memory_space<vmem>>) attributes {dimension_semantics = [], scalar_prefetch = 0 : i64, scratch_operands = 0 : i64, tpu.core_type = #tpu.core_type<tc>} {
    %c0 = arith.constant 0 : index
    %c0_0 = arith.constant 0 : index
    %0 = vector.load %arg1[%c0, %c0_0] : memref<64x64xf32, #tpu.memory_space<vmem>>, vector<64x64xf32>
    %c0_1 = arith.constant 0 : index
    %c0_2 = arith.constant 0 : index
    %c0_3 = arith.constant 0 : index
    %1 = vector.load %arg0[%c0_1, %c0_2, %c0_3] : memref<29x2x64xf32, #tpu.memory_space<vmem>>, vector<1x2x64xf32>
    %2 = vector.shape_cast %1 : vector<1x2x64xf32> to vector<2x64xf32>
    %3 = math.tanh %2 : vector<2x64xf32>
    %c1_i32 = arith.constant 1 : i32
    %cst = arith.constant dense<0.000000e+00> : vector<2x64xf32>
    %4 = tpu.matmul %3, %0, %cst {dimension_numbers = #tpu.dot_dimension_numbers<[1], [0], [0], [1], [0, 0, 1, 1], [], []>} : vector<2x64xf32>, vector<64x64xf32>, vector<2x64xf32> -> vector<2x64xf32>
    %5 = arith.index_cast %c1_i32 : i32 to index
    %c0_4 = arith.constant 0 : index
    %c0_5 = arith.constant 0 : index
    %6 = vector.load %arg0[%5, %c0_4, %c0_5] : memref<29x2x64xf32, #tpu.memory_space<vmem>>, vector<1x2x64xf32>
    %7 = vector.shape_cast %6 : vector<1x2x64xf32> to vector<2x64xf32>
    %8 = arith.addf %4, %7 : vector<2x64xf32>
    %9 = math.tanh %8 : vector<2x64xf32>
    %c1_i32_6 = arith.constant 1 : i32
    %10 = arith.subi %c1_i32, %c1_i32_6 : i32
    %11 = arith.index_cast %10 : i32 to index
    %c0_7 = arith.constant 0 : index
    %c0_8 = arith.constant 0 : index
    %12 = vector.load %arg2[%11, %c0_7, %c0_8] : memref<28x2x64xf32, #tpu.memory_space<vmem>>, vector<1x2x64xf32>
    %13 = vector.shape_cast %12 : vector<1x2x64xf32> to vector<2x64xf32>
    %14 = vector.shape_cast %9 : vector<2x64xf32> to vector<1x2x64xf32>
    tpu.vector_store %arg2[%11, %c0_7, %c0_8], %14 {strides = array<i32>} : memref<28x2x64xf32, #tpu.memory_space<vmem>>, vector<1x2x64xf32>,
    %c2_i32 = arith.constant 2 : i32
    %cst_9 = arith.constant dense<0.000000e+00> : vector<2x64xf32>
    %15 = tpu.matmul %9, %0, %cst_9 {dimension_numbers = #tpu.dot_dimension_numbers<[1], [0], [0], [1], [0, 0, 1, 1], [], []>} : vector<2x64xf32>, vector<64x64xf32>, vector<2x64xf32> -> vector<2x64xf32>
    %16 = arith.index_cast %c2_i32 : i32 to index
    %c0_10 = arith.constant 0 : index
    %c0_11 = arith.constant 0 : index
    %17 = vector.load %arg0[%16, %c0_10, %c0_11] : memref<29x2x64xf32, #tpu.memory_space<vmem>>, vector<1x2x64xf32>
    %18 = vector.shape_cast %17 : vector<1x2x64xf32> to vector<2x64xf32>
    %19 = arith.addf %15, %18 : vector<2x64xf32>
    %20 = math.tanh %19 : vector<2x64xf32>
    %c1_i32_12 = arith.constant 1 : i32
    %21 = arith.subi %c2_i32, %c1_i32_12 : i32
    %22 = arith.index_cast %21 : i32 to index
    %c0_13 = arith.constant 0 : index
    %c0_14 = arith.constant 0 : index
    %23 = vector.load %arg2[%22, %c0_13, %c0_14] : memref<28x2x64xf32, #tpu.memory_space<vmem>>, vector<1x2x64xf32>
    %24 = vector.shape_cast %23 : vector<1x2x64xf32> to vector<2x64xf32>
    %25 = vector.shape_cast %20 : vector<2x64xf32> to vector<1x2x64xf32>
    tpu.vector_store %arg2[%22, %c0_13, %c0_14], %25 {strides = array<i32>} : memref<28x2x64xf32, #tpu.memory_space<vmem>>, vector<1x2x64xf32>,
    %c3_i32 = arith.constant 3 : i32
    %cst_15 = arith.constant dense<0.000000e+00> : vector<2x64xf32>
    %26 = tpu.matmul %20, %0, %cst_15 {dimension_numbers = #tpu.dot_dimension_numbers<[1], [0], [0], [1], [0, 0, 1, 1], [], []>} : vector<2x64xf32>, vector<64x64xf32>, vector<2x64xf32> -> vector<2x64xf32>
    %27 = arith.index_cast %c3_i32 : i32 to index
    %c0_16 = arith.constant 0 : index
    %c0_17 = arith.constant 0 : index
    %28 = vector.load %arg0[%27, %c0_16, %c0_17] : memref<29x2x64xf32, #tpu.memory_space<vmem>>, vector<1x2x64xf32>
    %29 = vector.shape_cast %28 : vector<1x2x64xf32> to vector<2x64xf32>
    %30 = arith.addf %26, %29 : vector<2x64xf32>
    %31 = math.tanh %30 : vector<2x64xf32>
    %c1_i32_18 = arith.constant 1 : i32
    %32 = arith.subi %c3_i32, %c1_i32_18 : i32
    %33 = arith.index_cast %32 : i32 to index
    %c0_19 = arith.constant 0 : index
    %c0_20 = arith.constant 0 : index
    %34 = vector.load %arg2[%33, %c0_19, %c0_20] : memref<28x2x64xf32, #tpu.memory_space<vmem>>, vector<1x2x64xf32>
    %35 = vector.shape_cast %34 : vector<1x2x64xf32> to vector<2x64xf32>
    %36 = vector.shape_cast %31 : vector<2x64xf32> to vector<1x2x64xf32>
    tpu.vector_store %arg2[%33, %c0_19, %c0_20], %36 {strides = array<i32>} : memref<28x2x64xf32, #tpu.memory_space<vmem>>, vector<1x2x64xf32>,
    %c4_i32 = arith.constant 4 : i32
    %cst_21 = arith.constant dense<0.000000e+00> : vector<2x64xf32>
    %37 = tpu.matmul %31, %0, %cst_21 {dimension_numbers = #tpu.dot_dimension_numbers<[1], [0], [0], [1], [0, 0, 1, 1], [], []>} : vector<2x64xf32>, vector<64x64xf32>, vector<2x64xf32> -> vector<2x64xf32>
    %38 = arith.index_cast %c4_i32 : i32 to index
    %c0_22 = arith.constant 0 : index
    %c0_23 = arith.constant 0 : index
    %39 = vector.load %arg0[%38, %c0_22, %c0_23] : memref<29x2x64xf32, #tpu.memory_space<vmem>>, vector<1x2x64xf32>
    %40 = vector.shape_cast %39 : vector<1x2x64xf32> to vector<2x64xf32>
    %41 = arith.addf %37, %40 : vector<2x64xf32>
    %42 = math.tanh %41 : vector<2x64xf32>
    %c1_i32_24 = arith.constant 1 : i32
    %43 = arith.subi %c4_i32, %c1_i32_24 : i32
    %44 = arith.index_cast %43 : i32 to index
    %c0_25 = arith.constant 0 : index
    %c0_26 = arith.constant 0 : index
    %45 = vector.load %arg2[%44, %c0_25, %c0_26] : memref<28x2x64xf32, #tpu.memory_space<vmem>>, vector<1x2x64xf32>
    %46 = vector.shape_cast %45 : vector<1x2x64xf32> to vector<2x64xf32>
    %47 = vector.shape_cast %42 : vector<2x64xf32> to vector<1x2x64xf32>
    tpu.vector_store %arg2[%44, %c0_25, %c0_26], %47 {strides = array<i32>} : memref<28x2x64xf32, #tpu.memory_space<vmem>>, vector<1x2x64xf32>,
    %c5_i32 = arith.constant 5 : i32
    %cst_27 = arith.constant dense<0.000000e+00> : vector<2x64xf32>
    %48 = tpu.matmul %42, %0, %cst_27 {dimension_numbers = #tpu.dot_dimension_numbers<[1], [0], [0], [1], [0, 0, 1, 1], [], []>} : vector<2x64xf32>, vector<64x64xf32>, vector<2x64xf32> -> vector<2x64xf32>
    %49 = arith.index_cast %c5_i32 : i32 to index
    %c0_28 = arith.constant 0 : index
    %c0_29 = arith.constant 0 : index
    %50 = vector.load %arg0[%49, %c0_28, %c0_29] : memref<29x2x64xf32, #tpu.memory_space<vmem>>, vector<1x2x64xf32>
    %51 = vector.shape_cast %50 : vector<1x2x64xf32> to vector<2x64xf32>
    %52 = arith.addf %48, %51 : vector<2x64xf32>
    %53 = math.tanh %52 : vector<2x64xf32>
    %c1_i32_30 = arith.constant 1 : i32
    %54 = arith.subi %c5_i32, %c1_i32_30 : i32
    %55 = arith.index_cast %54 : i32 to index
    %c0_31 = arith.constant 0 : index
    %c0_32 = arith.constant 0 : index
    %56 = vector.load %arg2[%55, %c0_31, %c0_32] : memref<28x2x64xf32, #tpu.memory_space<vmem>>, vector<1x2x64xf32>
    %57 = vector.shape_cast %56 : vector<1x2x64xf32> to vector<2x64xf32>
    %58 = vector.shape_cast %53 : vector<2x64xf32> to vector<1x2x64xf32>
    tpu.vector_store %arg2[%55, %c0_31, %c0_32], %58 {strides = array<i32>} : memref<28x2x64xf32, #tpu.memory_space<vmem>>, vector<1x2x64xf32>,
    %c6_i32 = arith.constant 6 : i32
    %cst_33 = arith.constant dense<0.000000e+00> : vector<2x64xf32>
    %59 = tpu.matmul %53, %0, %cst_33 {dimension_numbers = #tpu.dot_dimension_numbers<[1], [0], [0], [1], [0, 0, 1, 1], [], []>} : vector<2x64xf32>, vector<64x64xf32>, vector<2x64xf32> -> vector<2x64xf32>
    %60 = arith.index_cast %c6_i32 : i32 to index
    %c0_34 = arith.constant 0 : index
    %c0_35 = arith.constant 0 : index
    %61 = vector.load %arg0[%60, %c0_34, %c0_35] : memref<29x2x64xf32, #tpu.memory_space<vmem>>, vector<1x2x64xf32>
    %62 = vector.shape_cast %61 : vector<1x2x64xf32> to vector<2x64xf32>
    %63 = arith.addf %59, %62 : vector<2x64xf32>
    %64 = math.tanh %63 : vector<2x64xf32>
    %c1_i32_36 = arith.constant 1 : i32
    %65 = arith.subi %c6_i32, %c1_i32_36 : i32
    %66 = arith.index_cast %65 : i32 to index
    %c0_37 = arith.constant 0 : index
    %c0_38 = arith.constant 0 : index
    %67 = vector.load %arg2[%66, %c0_37, %c0_38] : memref<28x2x64xf32, #tpu.memory_space<vmem>>, vector<1x2x64xf32>
    %68 = vector.shape_cast %67 : vector<1x2x64xf32> to vector<2x64xf32>
    %69 = vector.shape_cast %64 : vector<2x64xf32> to vector<1x2x64xf32>
    tpu.vector_store %arg2[%66, %c0_37, %c0_38], %69 {strides = array<i32>} : memref<28x2x64xf32, #tpu.memory_space<vmem>>, vector<1x2x64xf32>,
    %c7_i32 = arith.constant 7 : i32
    %cst_39 = arith.constant dense<0.000000e+00> : vector<2x64xf32>
    %70 = tpu.matmul %64, %0, %cst_39 {dimension_numbers = #tpu.dot_dimension_numbers<[1], [0], [0], [1], [0, 0, 1, 1], [], []>} : vector<2x64xf32>, vector<64x64xf32>, vector<2x64xf32> -> vector<2x64xf32>
    %71 = arith.index_cast %c7_i32 : i32 to index
    %c0_40 = arith.constant 0 : index
    %c0_41 = arith.constant 0 : index
    %72 = vector.load %arg0[%71, %c0_40, %c0_41] : memref<29x2x64xf32, #tpu.memory_space<vmem>>, vector<1x2x64xf32>
    %73 = vector.shape_cast %72 : vector<1x2x64xf32> to vector<2x64xf32>
    %74 = arith.addf %70, %73 : vector<2x64xf32>
    %75 = math.tanh %74 : vector<2x64xf32>
    %c1_i32_42 = arith.constant 1 : i32
    %76 = arith.subi %c7_i32, %c1_i32_42 : i32
    %77 = arith.index_cast %76 : i32 to index
    %c0_43 = arith.constant 0 : index
    %c0_44 = arith.constant 0 : index
    %78 = vector.load %arg2[%77, %c0_43, %c0_44] : memref<28x2x64xf32, #tpu.memory_space<vmem>>, vector<1x2x64xf32>
    %79 = vector.shape_cast %78 : vector<1x2x64xf32> to vector<2x64xf32>
    %80 = vector.shape_cast %75 : vector<2x64xf32> to vector<1x2x64xf32>
    tpu.vector_store %arg2[%77, %c0_43, %c0_44], %80 {strides = array<i32>} : memref<28x2x64xf32, #tpu.memory_space<vmem>>, vector<1x2x64xf32>,
    %c8_i32 = arith.constant 8 : i32
    %cst_45 = arith.constant dense<0.000000e+00> : vector<2x64xf32>
    %81 = tpu.matmul %75, %0, %cst_45 {dimension_numbers = #tpu.dot_dimension_numbers<[1], [0], [0], [1], [0, 0, 1, 1], [], []>} : vector<2x64xf32>, vector<64x64xf32>, vector<2x64xf32> -> vector<2x64xf32>
    %82 = arith.index_cast %c8_i32 : i32 to index
    %c0_46 = arith.constant 0 : index
    %c0_47 = arith.constant 0 : index
    %83 = vector.load %arg0[%82, %c0_46, %c0_47] : memref<29x2x64xf32, #tpu.memory_space<vmem>>, vector<1x2x64xf32>
    %84 = vector.shape_cast %83 : vector<1x2x64xf32> to vector<2x64xf32>
    %85 = arith.addf %81, %84 : vector<2x64xf32>
    %86 = math.tanh %85 : vector<2x64xf32>
    %c1_i32_48 = arith.constant 1 : i32
    %87 = arith.subi %c8_i32, %c1_i32_48 : i32
    %88 = arith.index_cast %87 : i32 to index
    %c0_49 = arith.constant 0 : index
    %c0_50 = arith.constant 0 : index
    %89 = vector.load %arg2[%88, %c0_49, %c0_50] : memref<28x2x64xf32, #tpu.memory_space<vmem>>, vector<1x2x64xf32>
    %90 = vector.shape_cast %89 : vector<1x2x64xf32> to vector<2x64xf32>
    %91 = vector.shape_cast %86 : vector<2x64xf32> to vector<1x2x64xf32>
    tpu.vector_store %arg2[%88, %c0_49, %c0_50], %91 {strides = array<i32>} : memref<28x2x64xf32, #tpu.memory_space<vmem>>, vector<1x2x64xf32>,
    %c9_i32 = arith.constant 9 : i32
    %cst_51 = arith.constant dense<0.000000e+00> : vector<2x64xf32>
    %92 = tpu.matmul %86, %0, %cst_51 {dimension_numbers = #tpu.dot_dimension_numbers<[1], [0], [0], [1], [0, 0, 1, 1], [], []>} : vector<2x64xf32>, vector<64x64xf32>, vector<2x64xf32> -> vector<2x64xf32>
    %93 = arith.index_cast %c9_i32 : i32 to index
    %c0_52 = arith.constant 0 : index
    %c0_53 = arith.constant 0 : index
    %94 = vector.load %arg0[%93, %c0_52, %c0_53] : memref<29x2x64xf32, #tpu.memory_space<vmem>>, vector<1x2x64xf32>
    %95 = vector.shape_cast %94 : vector<1x2x64xf32> to vector<2x64xf32>
    %96 = arith.addf %92, %95 : vector<2x64xf32>
    %97 = math.tanh %96 : vector<2x64xf32>
    %c1_i32_54 = arith.constant 1 : i32
    %98 = arith.subi %c9_i32, %c1_i32_54 : i32
    %99 = arith.index_cast %98 : i32 to index
    %c0_55 = arith.constant 0 : index
    %c0_56 = arith.constant 0 : index
    %100 = vector.load %arg2[%99, %c0_55, %c0_56] : memref<28x2x64xf32, #tpu.memory_space<vmem>>, vector<1x2x64xf32>
    %101 = vector.shape_cast %100 : vector<1x2x64xf32> to vector<2x64xf32>
    %102 = vector.shape_cast %97 : vector<2x64xf32> to vector<1x2x64xf32>
    tpu.vector_store %arg2[%99, %c0_55, %c0_56], %102 {strides = array<i32>} : memref<28x2x64xf32, #tpu.memory_space<vmem>>, vector<1x2x64xf32>,
    %c10_i32 = arith.constant 10 : i32
    %cst_57 = arith.constant dense<0.000000e+00> : vector<2x64xf32>
    %103 = tpu.matmul %97, %0, %cst_57 {dimension_numbers = #tpu.dot_dimension_numbers<[1], [0], [0], [1], [0, 0, 1, 1], [], []>} : vector<2x64xf32>, vector<64x64xf32>, vector<2x64xf32> -> vector<2x64xf32>
    %104 = arith.index_cast %c10_i32 : i32 to index
    %c0_58 = arith.constant 0 : index
    %c0_59 = arith.constant 0 : index
    %105 = vector.load %arg0[%104, %c0_58, %c0_59] : memref<29x2x64xf32, #tpu.memory_space<vmem>>, vector<1x2x64xf32>
    %106 = vector.shape_cast %105 : vector<1x2x64xf32> to vector<2x64xf32>
    %107 = arith.addf %103, %106 : vector<2x64xf32>
    %108 = math.tanh %107 : vector<2x64xf32>
    %c1_i32_60 = arith.constant 1 : i32
    %109 = arith.subi %c10_i32, %c1_i32_60 : i32
    %110 = arith.index_cast %109 : i32 to index
    %c0_61 = arith.constant 0 : index
    %c0_62 = arith.constant 0 : index
    %111 = vector.load %arg2[%110, %c0_61, %c0_62] : memref<28x2x64xf32, #tpu.memory_space<vmem>>, vector<1x2x64xf32>
    %112 = vector.shape_cast %111 : vector<1x2x64xf32> to vector<2x64xf32>
    %113 = vector.shape_cast %108 : vector<2x64xf32> to vector<1x2x64xf32>
    tpu.vector_store %arg2[%110, %c0_61, %c0_62], %113 {strides = array<i32>} : memref<28x2x64xf32, #tpu.memory_space<vmem>>, vector<1x2x64xf32>,
    %c11_i32 = arith.constant 11 : i32
    %cst_63 = arith.constant dense<0.000000e+00> : vector<2x64xf32>
    %114 = tpu.matmul %108, %0, %cst_63 {dimension_numbers = #tpu.dot_dimension_numbers<[1], [0], [0], [1], [0, 0, 1, 1], [], []>} : vector<2x64xf32>, vector<64x64xf32>, vector<2x64xf32> -> vector<2x64xf32>
    %115 = arith.index_cast %c11_i32 : i32 to index
    %c0_64 = arith.constant 0 : index
    %c0_65 = arith.constant 0 : index
    %116 = vector.load %arg0[%115, %c0_64, %c0_65] : memref<29x2x64xf32, #tpu.memory_space<vmem>>, vector<1x2x64xf32>
    %117 = vector.shape_cast %116 : vector<1x2x64xf32> to vector<2x64xf32>
    %118 = arith.addf %114, %117 : vector<2x64xf32>
    %119 = math.tanh %118 : vector<2x64xf32>
    %c1_i32_66 = arith.constant 1 : i32
    %120 = arith.subi %c11_i32, %c1_i32_66 : i32
    %121 = arith.index_cast %120 : i32 to index
    %c0_67 = arith.constant 0 : index
    %c0_68 = arith.constant 0 : index
    %122 = vector.load %arg2[%121, %c0_67, %c0_68] : memref<28x2x64xf32, #tpu.memory_space<vmem>>, vector<1x2x64xf32>
    %123 = vector.shape_cast %122 : vector<1x2x64xf32> to vector<2x64xf32>
    %124 = vector.shape_cast %119 : vector<2x64xf32> to vector<1x2x64xf32>
    tpu.vector_store %arg2[%121, %c0_67, %c0_68], %124 {strides = array<i32>} : memref<28x2x64xf32, #tpu.memory_space<vmem>>, vector<1x2x64xf32>,
    %c12_i32 = arith.constant 12 : i32
    %cst_69 = arith.constant dense<0.000000e+00> : vector<2x64xf32>
    %125 = tpu.matmul %119, %0, %cst_69 {dimension_numbers = #tpu.dot_dimension_numbers<[1], [0], [0], [1], [0, 0, 1, 1], [], []>} : vector<2x64xf32>, vector<64x64xf32>, vector<2x64xf32> -> vector<2x64xf32>
    %126 = arith.index_cast %c12_i32 : i32 to index
    %c0_70 = arith.constant 0 : index
    %c0_71 = arith.constant 0 : index
    %127 = vector.load %arg0[%126, %c0_70, %c0_71] : memref<29x2x64xf32, #tpu.memory_space<vmem>>, vector<1x2x64xf32>
    %128 = vector.shape_cast %127 : vector<1x2x64xf32> to vector<2x64xf32>
    %129 = arith.addf %125, %128 : vector<2x64xf32>
    %130 = math.tanh %129 : vector<2x64xf32>
    %c1_i32_72 = arith.constant 1 : i32
    %131 = arith.subi %c12_i32, %c1_i32_72 : i32
    %132 = arith.index_cast %131 : i32 to index
    %c0_73 = arith.constant 0 : index
    %c0_74 = arith.constant 0 : index
    %133 = vector.load %arg2[%132, %c0_73, %c0_74] : memref<28x2x64xf32, #tpu.memory_space<vmem>>, vector<1x2x64xf32>
    %134 = vector.shape_cast %133 : vector<1x2x64xf32> to vector<2x64xf32>
    %135 = vector.shape_cast %130 : vector<2x64xf32> to vector<1x2x64xf32>
    tpu.vector_store %arg2[%132, %c0_73, %c0_74], %135 {strides = array<i32>} : memref<28x2x64xf32, #tpu.memory_space<vmem>>, vector<1x2x64xf32>,
    %c13_i32 = arith.constant 13 : i32
    %cst_75 = arith.constant dense<0.000000e+00> : vector<2x64xf32>
    %136 = tpu.matmul %130, %0, %cst_75 {dimension_numbers = #tpu.dot_dimension_numbers<[1], [0], [0], [1], [0, 0, 1, 1], [], []>} : vector<2x64xf32>, vector<64x64xf32>, vector<2x64xf32> -> vector<2x64xf32>
    %137 = arith.index_cast %c13_i32 : i32 to index
    %c0_76 = arith.constant 0 : index
    %c0_77 = arith.constant 0 : index
    %138 = vector.load %arg0[%137, %c0_76, %c0_77] : memref<29x2x64xf32, #tpu.memory_space<vmem>>, vector<1x2x64xf32>
    %139 = vector.shape_cast %138 : vector<1x2x64xf32> to vector<2x64xf32>
    %140 = arith.addf %136, %139 : vector<2x64xf32>
    %141 = math.tanh %140 : vector<2x64xf32>
    %c1_i32_78 = arith.constant 1 : i32
    %142 = arith.subi %c13_i32, %c1_i32_78 : i32
    %143 = arith.index_cast %142 : i32 to index
    %c0_79 = arith.constant 0 : index
    %c0_80 = arith.constant 0 : index
    %144 = vector.load %arg2[%143, %c0_79, %c0_80] : memref<28x2x64xf32, #tpu.memory_space<vmem>>, vector<1x2x64xf32>
    %145 = vector.shape_cast %144 : vector<1x2x64xf32> to vector<2x64xf32>
    %146 = vector.shape_cast %141 : vector<2x64xf32> to vector<1x2x64xf32>
    tpu.vector_store %arg2[%143, %c0_79, %c0_80], %146 {strides = array<i32>} : memref<28x2x64xf32, #tpu.memory_space<vmem>>, vector<1x2x64xf32>,
    %c14_i32 = arith.constant 14 : i32
    %cst_81 = arith.constant dense<0.000000e+00> : vector<2x64xf32>
    %147 = tpu.matmul %141, %0, %cst_81 {dimension_numbers = #tpu.dot_dimension_numbers<[1], [0], [0], [1], [0, 0, 1, 1], [], []>} : vector<2x64xf32>, vector<64x64xf32>, vector<2x64xf32> -> vector<2x64xf32>
    %148 = arith.index_cast %c14_i32 : i32 to index
    %c0_82 = arith.constant 0 : index
    %c0_83 = arith.constant 0 : index
    %149 = vector.load %arg0[%148, %c0_82, %c0_83] : memref<29x2x64xf32, #tpu.memory_space<vmem>>, vector<1x2x64xf32>
    %150 = vector.shape_cast %149 : vector<1x2x64xf32> to vector<2x64xf32>
    %151 = arith.addf %147, %150 : vector<2x64xf32>
    %152 = math.tanh %151 : vector<2x64xf32>
    %c1_i32_84 = arith.constant 1 : i32
    %153 = arith.subi %c14_i32, %c1_i32_84 : i32
    %154 = arith.index_cast %153 : i32 to index
    %c0_85 = arith.constant 0 : index
    %c0_86 = arith.constant 0 : index
    %155 = vector.load %arg2[%154, %c0_85, %c0_86] : memref<28x2x64xf32, #tpu.memory_space<vmem>>, vector<1x2x64xf32>
    %156 = vector.shape_cast %155 : vector<1x2x64xf32> to vector<2x64xf32>
    %157 = vector.shape_cast %152 : vector<2x64xf32> to vector<1x2x64xf32>
    tpu.vector_store %arg2[%154, %c0_85, %c0_86], %157 {strides = array<i32>} : memref<28x2x64xf32, #tpu.memory_space<vmem>>, vector<1x2x64xf32>,
    %c15_i32 = arith.constant 15 : i32
    %cst_87 = arith.constant dense<0.000000e+00> : vector<2x64xf32>
    %158 = tpu.matmul %152, %0, %cst_87 {dimension_numbers = #tpu.dot_dimension_numbers<[1], [0], [0], [1], [0, 0, 1, 1], [], []>} : vector<2x64xf32>, vector<64x64xf32>, vector<2x64xf32> -> vector<2x64xf32>
    %159 = arith.index_cast %c15_i32 : i32 to index
    %c0_88 = arith.constant 0 : index
    %c0_89 = arith.constant 0 : index
    %160 = vector.load %arg0[%159, %c0_88, %c0_89] : memref<29x2x64xf32, #tpu.memory_space<vmem>>, vector<1x2x64xf32>
    %161 = vector.shape_cast %160 : vector<1x2x64xf32> to vector<2x64xf32>
    %162 = arith.addf %158, %161 : vector<2x64xf32>
    %163 = math.tanh %162 : vector<2x64xf32>
    %c1_i32_90 = arith.constant 1 : i32
    %164 = arith.subi %c15_i32, %c1_i32_90 : i32
    %165 = arith.index_cast %164 : i32 to index
    %c0_91 = arith.constant 0 : index
    %c0_92 = arith.constant 0 : index
    %166 = vector.load %arg2[%165, %c0_91, %c0_92] : memref<28x2x64xf32, #tpu.memory_space<vmem>>, vector<1x2x64xf32>
    %167 = vector.shape_cast %166 : vector<1x2x64xf32> to vector<2x64xf32>
    %168 = vector.shape_cast %163 : vector<2x64xf32> to vector<1x2x64xf32>
    tpu.vector_store %arg2[%165, %c0_91, %c0_92], %168 {strides = array<i32>} : memref<28x2x64xf32, #tpu.memory_space<vmem>>, vector<1x2x64xf32>,
    %c16_i32 = arith.constant 16 : i32
    %cst_93 = arith.constant dense<0.000000e+00> : vector<2x64xf32>
    %169 = tpu.matmul %163, %0, %cst_93 {dimension_numbers = #tpu.dot_dimension_numbers<[1], [0], [0], [1], [0, 0, 1, 1], [], []>} : vector<2x64xf32>, vector<64x64xf32>, vector<2x64xf32> -> vector<2x64xf32>
    %170 = arith.index_cast %c16_i32 : i32 to index
    %c0_94 = arith.constant 0 : index
    %c0_95 = arith.constant 0 : index
    %171 = vector.load %arg0[%170, %c0_94, %c0_95] : memref<29x2x64xf32, #tpu.memory_space<vmem>>, vector<1x2x64xf32>
    %172 = vector.shape_cast %171 : vector<1x2x64xf32> to vector<2x64xf32>
    %173 = arith.addf %169, %172 : vector<2x64xf32>
    %174 = math.tanh %173 : vector<2x64xf32>
    %c1_i32_96 = arith.constant 1 : i32
    %175 = arith.subi %c16_i32, %c1_i32_96 : i32
    %176 = arith.index_cast %175 : i32 to index
    %c0_97 = arith.constant 0 : index
    %c0_98 = arith.constant 0 : index
    %177 = vector.load %arg2[%176, %c0_97, %c0_98] : memref<28x2x64xf32, #tpu.memory_space<vmem>>, vector<1x2x64xf32>
    %178 = vector.shape_cast %177 : vector<1x2x64xf32> to vector<2x64xf32>
    %179 = vector.shape_cast %174 : vector<2x64xf32> to vector<1x2x64xf32>
    tpu.vector_store %arg2[%176, %c0_97, %c0_98], %179 {strides = array<i32>} : memref<28x2x64xf32, #tpu.memory_space<vmem>>, vector<1x2x64xf32>,
    %c17_i32 = arith.constant 17 : i32
    %cst_99 = arith.constant dense<0.000000e+00> : vector<2x64xf32>
    %180 = tpu.matmul %174, %0, %cst_99 {dimension_numbers = #tpu.dot_dimension_numbers<[1], [0], [0], [1], [0, 0, 1, 1], [], []>} : vector<2x64xf32>, vector<64x64xf32>, vector<2x64xf32> -> vector<2x64xf32>
    %181 = arith.index_cast %c17_i32 : i32 to index
    %c0_100 = arith.constant 0 : index
    %c0_101 = arith.constant 0 : index
    %182 = vector.load %arg0[%181, %c0_100, %c0_101] : memref<29x2x64xf32, #tpu.memory_space<vmem>>, vector<1x2x64xf32>
    %183 = vector.shape_cast %182 : vector<1x2x64xf32> to vector<2x64xf32>
    %184 = arith.addf %180, %183 : vector<2x64xf32>
    %185 = math.tanh %184 : vector<2x64xf32>
    %c1_i32_102 = arith.constant 1 : i32
    %186 = arith.subi %c17_i32, %c1_i32_102 : i32
    %187 = arith.index_cast %186 : i32 to index
    %c0_103 = arith.constant 0 : index
    %c0_104 = arith.constant 0 : index
    %188 = vector.load %arg2[%187, %c0_103, %c0_104] : memref<28x2x64xf32, #tpu.memory_space<vmem>>, vector<1x2x64xf32>
    %189 = vector.shape_cast %188 : vector<1x2x64xf32> to vector<2x64xf32>
    %190 = vector.shape_cast %185 : vector<2x64xf32> to vector<1x2x64xf32>
    tpu.vector_store %arg2[%187, %c0_103, %c0_104], %190 {strides = array<i32>} : memref<28x2x64xf32, #tpu.memory_space<vmem>>, vector<1x2x64xf32>,
    %c18_i32 = arith.constant 18 : i32
    %cst_105 = arith.constant dense<0.000000e+00> : vector<2x64xf32>
    %191 = tpu.matmul %185, %0, %cst_105 {dimension_numbers = #tpu.dot_dimension_numbers<[1], [0], [0], [1], [0, 0, 1, 1], [], []>} : vector<2x64xf32>, vector<64x64xf32>, vector<2x64xf32> -> vector<2x64xf32>
    %192 = arith.index_cast %c18_i32 : i32 to index
    %c0_106 = arith.constant 0 : index
    %c0_107 = arith.constant 0 : index
    %193 = vector.load %arg0[%192, %c0_106, %c0_107] : memref<29x2x64xf32, #tpu.memory_space<vmem>>, vector<1x2x64xf32>
    %194 = vector.shape_cast %193 : vector<1x2x64xf32> to vector<2x64xf32>
    %195 = arith.addf %191, %194 : vector<2x64xf32>
    %196 = math.tanh %195 : vector<2x64xf32>
    %c1_i32_108 = arith.constant 1 : i32
    %197 = arith.subi %c18_i32, %c1_i32_108 : i32
    %198 = arith.index_cast %197 : i32 to index
    %c0_109 = arith.constant 0 : index
    %c0_110 = arith.constant 0 : index
    %199 = vector.load %arg2[%198, %c0_109, %c0_110] : memref<28x2x64xf32, #tpu.memory_space<vmem>>, vector<1x2x64xf32>
    %200 = vector.shape_cast %199 : vector<1x2x64xf32> to vector<2x64xf32>
    %201 = vector.shape_cast %196 : vector<2x64xf32> to vector<1x2x64xf32>
    tpu.vector_store %arg2[%198, %c0_109, %c0_110], %201 {strides = array<i32>} : memref<28x2x64xf32, #tpu.memory_space<vmem>>, vector<1x2x64xf32>,
    %c19_i32 = arith.constant 19 : i32
    %cst_111 = arith.constant dense<0.000000e+00> : vector<2x64xf32>
    %202 = tpu.matmul %196, %0, %cst_111 {dimension_numbers = #tpu.dot_dimension_numbers<[1], [0], [0], [1], [0, 0, 1, 1], [], []>} : vector<2x64xf32>, vector<64x64xf32>, vector<2x64xf32> -> vector<2x64xf32>
    %203 = arith.index_cast %c19_i32 : i32 to index
    %c0_112 = arith.constant 0 : index
    %c0_113 = arith.constant 0 : index
    %204 = vector.load %arg0[%203, %c0_112, %c0_113] : memref<29x2x64xf32, #tpu.memory_space<vmem>>, vector<1x2x64xf32>
    %205 = vector.shape_cast %204 : vector<1x2x64xf32> to vector<2x64xf32>
    %206 = arith.addf %202, %205 : vector<2x64xf32>
    %207 = math.tanh %206 : vector<2x64xf32>
    %c1_i32_114 = arith.constant 1 : i32
    %208 = arith.subi %c19_i32, %c1_i32_114 : i32
    %209 = arith.index_cast %208 : i32 to index
    %c0_115 = arith.constant 0 : index
    %c0_116 = arith.constant 0 : index
    %210 = vector.load %arg2[%209, %c0_115, %c0_116] : memref<28x2x64xf32, #tpu.memory_space<vmem>>, vector<1x2x64xf32>
    %211 = vector.shape_cast %210 : vector<1x2x64xf32> to vector<2x64xf32>
    %212 = vector.shape_cast %207 : vector<2x64xf32> to vector<1x2x64xf32>
    tpu.vector_store %arg2[%209, %c0_115, %c0_116], %212 {strides = array<i32>} : memref<28x2x64xf32, #tpu.memory_space<vmem>>, vector<1x2x64xf32>,
    %c20_i32 = arith.constant 20 : i32
    %cst_117 = arith.constant dense<0.000000e+00> : vector<2x64xf32>
    %213 = tpu.matmul %207, %0, %cst_117 {dimension_numbers = #tpu.dot_dimension_numbers<[1], [0], [0], [1], [0, 0, 1, 1], [], []>} : vector<2x64xf32>, vector<64x64xf32>, vector<2x64xf32> -> vector<2x64xf32>
    %214 = arith.index_cast %c20_i32 : i32 to index
    %c0_118 = arith.constant 0 : index
    %c0_119 = arith.constant 0 : index
    %215 = vector.load %arg0[%214, %c0_118, %c0_119] : memref<29x2x64xf32, #tpu.memory_space<vmem>>, vector<1x2x64xf32>
    %216 = vector.shape_cast %215 : vector<1x2x64xf32> to vector<2x64xf32>
    %217 = arith.addf %213, %216 : vector<2x64xf32>
    %218 = math.tanh %217 : vector<2x64xf32>
    %c1_i32_120 = arith.constant 1 : i32
    %219 = arith.subi %c20_i32, %c1_i32_120 : i32
    %220 = arith.index_cast %219 : i32 to index
    %c0_121 = arith.constant 0 : index
    %c0_122 = arith.constant 0 : index
    %221 = vector.load %arg2[%220, %c0_121, %c0_122] : memref<28x2x64xf32, #tpu.memory_space<vmem>>, vector<1x2x64xf32>
    %222 = vector.shape_cast %221 : vector<1x2x64xf32> to vector<2x64xf32>
    %223 = vector.shape_cast %218 : vector<2x64xf32> to vector<1x2x64xf32>
    tpu.vector_store %arg2[%220, %c0_121, %c0_122], %223 {strides = array<i32>} : memref<28x2x64xf32, #tpu.memory_space<vmem>>, vector<1x2x64xf32>,
    %c21_i32 = arith.constant 21 : i32
    %cst_123 = arith.constant dense<0.000000e+00> : vector<2x64xf32>
    %224 = tpu.matmul %218, %0, %cst_123 {dimension_numbers = #tpu.dot_dimension_numbers<[1], [0], [0], [1], [0, 0, 1, 1], [], []>} : vector<2x64xf32>, vector<64x64xf32>, vector<2x64xf32> -> vector<2x64xf32>
    %225 = arith.index_cast %c21_i32 : i32 to index
    %c0_124 = arith.constant 0 : index
    %c0_125 = arith.constant 0 : index
    %226 = vector.load %arg0[%225, %c0_124, %c0_125] : memref<29x2x64xf32, #tpu.memory_space<vmem>>, vector<1x2x64xf32>
    %227 = vector.shape_cast %226 : vector<1x2x64xf32> to vector<2x64xf32>
    %228 = arith.addf %224, %227 : vector<2x64xf32>
    %229 = math.tanh %228 : vector<2x64xf32>
    %c1_i32_126 = arith.constant 1 : i32
    %230 = arith.subi %c21_i32, %c1_i32_126 : i32
    %231 = arith.index_cast %230 : i32 to index
    %c0_127 = arith.constant 0 : index
    %c0_128 = arith.constant 0 : index
    %232 = vector.load %arg2[%231, %c0_127, %c0_128] : memref<28x2x64xf32, #tpu.memory_space<vmem>>, vector<1x2x64xf32>
    %233 = vector.shape_cast %232 : vector<1x2x64xf32> to vector<2x64xf32>
    %234 = vector.shape_cast %229 : vector<2x64xf32> to vector<1x2x64xf32>
    tpu.vector_store %arg2[%231, %c0_127, %c0_128], %234 {strides = array<i32>} : memref<28x2x64xf32, #tpu.memory_space<vmem>>, vector<1x2x64xf32>,
    %c22_i32 = arith.constant 22 : i32
    %cst_129 = arith.constant dense<0.000000e+00> : vector<2x64xf32>
    %235 = tpu.matmul %229, %0, %cst_129 {dimension_numbers = #tpu.dot_dimension_numbers<[1], [0], [0], [1], [0, 0, 1, 1], [], []>} : vector<2x64xf32>, vector<64x64xf32>, vector<2x64xf32> -> vector<2x64xf32>
    %236 = arith.index_cast %c22_i32 : i32 to index
    %c0_130 = arith.constant 0 : index
    %c0_131 = arith.constant 0 : index
    %237 = vector.load %arg0[%236, %c0_130, %c0_131] : memref<29x2x64xf32, #tpu.memory_space<vmem>>, vector<1x2x64xf32>
    %238 = vector.shape_cast %237 : vector<1x2x64xf32> to vector<2x64xf32>
    %239 = arith.addf %235, %238 : vector<2x64xf32>
    %240 = math.tanh %239 : vector<2x64xf32>
    %c1_i32_132 = arith.constant 1 : i32
    %241 = arith.subi %c22_i32, %c1_i32_132 : i32
    %242 = arith.index_cast %241 : i32 to index
    %c0_133 = arith.constant 0 : index
    %c0_134 = arith.constant 0 : index
    %243 = vector.load %arg2[%242, %c0_133, %c0_134] : memref<28x2x64xf32, #tpu.memory_space<vmem>>, vector<1x2x64xf32>
    %244 = vector.shape_cast %243 : vector<1x2x64xf32> to vector<2x64xf32>
    %245 = vector.shape_cast %240 : vector<2x64xf32> to vector<1x2x64xf32>
    tpu.vector_store %arg2[%242, %c0_133, %c0_134], %245 {strides = array<i32>} : memref<28x2x64xf32, #tpu.memory_space<vmem>>, vector<1x2x64xf32>,
    %c23_i32 = arith.constant 23 : i32
    %cst_135 = arith.constant dense<0.000000e+00> : vector<2x64xf32>
    %246 = tpu.matmul %240, %0, %cst_135 {dimension_numbers = #tpu.dot_dimension_numbers<[1], [0], [0], [1], [0, 0, 1, 1], [], []>} : vector<2x64xf32>, vector<64x64xf32>, vector<2x64xf32> -> vector<2x64xf32>
    %247 = arith.index_cast %c23_i32 : i32 to index
    %c0_136 = arith.constant 0 : index
    %c0_137 = arith.constant 0 : index
    %248 = vector.load %arg0[%247, %c0_136, %c0_137] : memref<29x2x64xf32, #tpu.memory_space<vmem>>, vector<1x2x64xf32>
    %249 = vector.shape_cast %248 : vector<1x2x64xf32> to vector<2x64xf32>
    %250 = arith.addf %246, %249 : vector<2x64xf32>
    %251 = math.tanh %250 : vector<2x64xf32>
    %c1_i32_138 = arith.constant 1 : i32
    %252 = arith.subi %c23_i32, %c1_i32_138 : i32
    %253 = arith.index_cast %252 : i32 to index
    %c0_139 = arith.constant 0 : index
    %c0_140 = arith.constant 0 : index
    %254 = vector.load %arg2[%253, %c0_139, %c0_140] : memref<28x2x64xf32, #tpu.memory_space<vmem>>, vector<1x2x64xf32>
    %255 = vector.shape_cast %254 : vector<1x2x64xf32> to vector<2x64xf32>
    %256 = vector.shape_cast %251 : vector<2x64xf32> to vector<1x2x64xf32>
    tpu.vector_store %arg2[%253, %c0_139, %c0_140], %256 {strides = array<i32>} : memref<28x2x64xf32, #tpu.memory_space<vmem>>, vector<1x2x64xf32>,
    %c24_i32 = arith.constant 24 : i32
    %cst_141 = arith.constant dense<0.000000e+00> : vector<2x64xf32>
    %257 = tpu.matmul %251, %0, %cst_141 {dimension_numbers = #tpu.dot_dimension_numbers<[1], [0], [0], [1], [0, 0, 1, 1], [], []>} : vector<2x64xf32>, vector<64x64xf32>, vector<2x64xf32> -> vector<2x64xf32>
    %258 = arith.index_cast %c24_i32 : i32 to index
    %c0_142 = arith.constant 0 : index
    %c0_143 = arith.constant 0 : index
    %259 = vector.load %arg0[%258, %c0_142, %c0_143] : memref<29x2x64xf32, #tpu.memory_space<vmem>>, vector<1x2x64xf32>
    %260 = vector.shape_cast %259 : vector<1x2x64xf32> to vector<2x64xf32>
    %261 = arith.addf %257, %260 : vector<2x64xf32>
    %262 = math.tanh %261 : vector<2x64xf32>
    %c1_i32_144 = arith.constant 1 : i32
    %263 = arith.subi %c24_i32, %c1_i32_144 : i32
    %264 = arith.index_cast %263 : i32 to index
    %c0_145 = arith.constant 0 : index
    %c0_146 = arith.constant 0 : index
    %265 = vector.load %arg2[%264, %c0_145, %c0_146] : memref<28x2x64xf32, #tpu.memory_space<vmem>>, vector<1x2x64xf32>
    %266 = vector.shape_cast %265 : vector<1x2x64xf32> to vector<2x64xf32>
    %267 = vector.shape_cast %262 : vector<2x64xf32> to vector<1x2x64xf32>
    tpu.vector_store %arg2[%264, %c0_145, %c0_146], %267 {strides = array<i32>} : memref<28x2x64xf32, #tpu.memory_space<vmem>>, vector<1x2x64xf32>,
    %c25_i32 = arith.constant 25 : i32
    %cst_147 = arith.constant dense<0.000000e+00> : vector<2x64xf32>
    %268 = tpu.matmul %262, %0, %cst_147 {dimension_numbers = #tpu.dot_dimension_numbers<[1], [0], [0], [1], [0, 0, 1, 1], [], []>} : vector<2x64xf32>, vector<64x64xf32>, vector<2x64xf32> -> vector<2x64xf32>
    %269 = arith.index_cast %c25_i32 : i32 to index
    %c0_148 = arith.constant 0 : index
    %c0_149 = arith.constant 0 : index
    %270 = vector.load %arg0[%269, %c0_148, %c0_149] : memref<29x2x64xf32, #tpu.memory_space<vmem>>, vector<1x2x64xf32>
    %271 = vector.shape_cast %270 : vector<1x2x64xf32> to vector<2x64xf32>
    %272 = arith.addf %268, %271 : vector<2x64xf32>
    %273 = math.tanh %272 : vector<2x64xf32>
    %c1_i32_150 = arith.constant 1 : i32
    %274 = arith.subi %c25_i32, %c1_i32_150 : i32
    %275 = arith.index_cast %274 : i32 to index
    %c0_151 = arith.constant 0 : index
    %c0_152 = arith.constant 0 : index
    %276 = vector.load %arg2[%275, %c0_151, %c0_152] : memref<28x2x64xf32, #tpu.memory_space<vmem>>, vector<1x2x64xf32>
    %277 = vector.shape_cast %276 : vector<1x2x64xf32> to vector<2x64xf32>
    %278 = vector.shape_cast %273 : vector<2x64xf32> to vector<1x2x64xf32>
    tpu.vector_store %arg2[%275, %c0_151, %c0_152], %278 {strides = array<i32>} : memref<28x2x64xf32, #tpu.memory_space<vmem>>, vector<1x2x64xf32>,
    %c26_i32 = arith.constant 26 : i32
    %cst_153 = arith.constant dense<0.000000e+00> : vector<2x64xf32>
    %279 = tpu.matmul %273, %0, %cst_153 {dimension_numbers = #tpu.dot_dimension_numbers<[1], [0], [0], [1], [0, 0, 1, 1], [], []>} : vector<2x64xf32>, vector<64x64xf32>, vector<2x64xf32> -> vector<2x64xf32>
    %280 = arith.index_cast %c26_i32 : i32 to index
    %c0_154 = arith.constant 0 : index
    %c0_155 = arith.constant 0 : index
    %281 = vector.load %arg0[%280, %c0_154, %c0_155] : memref<29x2x64xf32, #tpu.memory_space<vmem>>, vector<1x2x64xf32>
    %282 = vector.shape_cast %281 : vector<1x2x64xf32> to vector<2x64xf32>
    %283 = arith.addf %279, %282 : vector<2x64xf32>
    %284 = math.tanh %283 : vector<2x64xf32>
    %c1_i32_156 = arith.constant 1 : i32
    %285 = arith.subi %c26_i32, %c1_i32_156 : i32
    %286 = arith.index_cast %285 : i32 to index
    %c0_157 = arith.constant 0 : index
    %c0_158 = arith.constant 0 : index
    %287 = vector.load %arg2[%286, %c0_157, %c0_158] : memref<28x2x64xf32, #tpu.memory_space<vmem>>, vector<1x2x64xf32>
    %288 = vector.shape_cast %287 : vector<1x2x64xf32> to vector<2x64xf32>
    %289 = vector.shape_cast %284 : vector<2x64xf32> to vector<1x2x64xf32>
    tpu.vector_store %arg2[%286, %c0_157, %c0_158], %289 {strides = array<i32>} : memref<28x2x64xf32, #tpu.memory_space<vmem>>, vector<1x2x64xf32>,
    %c27_i32 = arith.constant 27 : i32
    %cst_159 = arith.constant dense<0.000000e+00> : vector<2x64xf32>
    %290 = tpu.matmul %284, %0, %cst_159 {dimension_numbers = #tpu.dot_dimension_numbers<[1], [0], [0], [1], [0, 0, 1, 1], [], []>} : vector<2x64xf32>, vector<64x64xf32>, vector<2x64xf32> -> vector<2x64xf32>
    %291 = arith.index_cast %c27_i32 : i32 to index
    %c0_160 = arith.constant 0 : index
    %c0_161 = arith.constant 0 : index
    %292 = vector.load %arg0[%291, %c0_160, %c0_161] : memref<29x2x64xf32, #tpu.memory_space<vmem>>, vector<1x2x64xf32>
    %293 = vector.shape_cast %292 : vector<1x2x64xf32> to vector<2x64xf32>
    %294 = arith.addf %290, %293 : vector<2x64xf32>
    %295 = math.tanh %294 : vector<2x64xf32>
    %c1_i32_162 = arith.constant 1 : i32
    %296 = arith.subi %c27_i32, %c1_i32_162 : i32
    %297 = arith.index_cast %296 : i32 to index
    %c0_163 = arith.constant 0 : index
    %c0_164 = arith.constant 0 : index
    %298 = vector.load %arg2[%297, %c0_163, %c0_164] : memref<28x2x64xf32, #tpu.memory_space<vmem>>, vector<1x2x64xf32>
    %299 = vector.shape_cast %298 : vector<1x2x64xf32> to vector<2x64xf32>
    %300 = vector.shape_cast %295 : vector<2x64xf32> to vector<1x2x64xf32>
    tpu.vector_store %arg2[%297, %c0_163, %c0_164], %300 {strides = array<i32>} : memref<28x2x64xf32, #tpu.memory_space<vmem>>, vector<1x2x64xf32>,
    %c28_i32 = arith.constant 28 : i32
    %cst_165 = arith.constant dense<0.000000e+00> : vector<2x64xf32>
    %301 = tpu.matmul %295, %0, %cst_165 {dimension_numbers = #tpu.dot_dimension_numbers<[1], [0], [0], [1], [0, 0, 1, 1], [], []>} : vector<2x64xf32>, vector<64x64xf32>, vector<2x64xf32> -> vector<2x64xf32>
    %302 = arith.index_cast %c28_i32 : i32 to index
    %c0_166 = arith.constant 0 : index
    %c0_167 = arith.constant 0 : index
    %303 = vector.load %arg0[%302, %c0_166, %c0_167] : memref<29x2x64xf32, #tpu.memory_space<vmem>>, vector<1x2x64xf32>
    %304 = vector.shape_cast %303 : vector<1x2x64xf32> to vector<2x64xf32>
    %305 = arith.addf %301, %304 : vector<2x64xf32>
    %306 = math.tanh %305 : vector<2x64xf32>
    %c1_i32_168 = arith.constant 1 : i32
    %307 = arith.subi %c28_i32, %c1_i32_168 : i32
    %308 = arith.index_cast %307 : i32 to index
    %c0_169 = arith.constant 0 : index
    %c0_170 = arith.constant 0 : index
    %309 = vector.load %arg2[%308, %c0_169, %c0_170] : memref<28x2x64xf32, #tpu.memory_space<vmem>>, vector<1x2x64xf32>
    %310 = vector.shape_cast %309 : vector<1x2x64xf32> to vector<2x64xf32>
    %311 = vector.shape_cast %306 : vector<2x64xf32> to vector<1x2x64xf32>
    tpu.vector_store %arg2[%308, %c0_169, %c0_170], %311 {strides = array<i32>} : memref<28x2x64xf32, #tpu.memory_space<vmem>>, vector<1x2x64xf32>,
    %c28_i32_171 = arith.constant 28 : i32
    return
  }
}

</mosaic_0001>

<bundles_post_ra>
// kernel: rnn_forward.1
= control target key start
LH: loop header
LB: loop body
LE: loop exit
PB: predicated region body
PF: predicated region fallthrough
CT: control target
= control target key end

     0   :  { %v3474_v0 = vmov 0.0|0.0   ;;  %vm3475_vm0 = vmmov 0   ;;  %v3476_v4 = vmov 0.0   ;;  %vm23_vm1 = vcmask 523264   ;;  %s4031_s1 = inlined_call_operand.vmem [shape: f32[64,64], index: 1, kind: input, shape index: {}]   ;;  %s4032_s0 = inlined_call_operand.vmem [shape: f32[29,2,64], index: 0, kind: input, shape index: {}]   ;;  %s4033_s2 = inlined_call_operand.vmem [shape: f32[28,2,64], index: 2, kind: output, shape index: {}]  }
   0x1   :  { %3077 = vmatprep.subr.bf16.mxu0 %v3474_v0  ;;  %v11_v1 = vld [vmem:[%s4031_s1] sm:$0xff]  ;;  %v12_v2 = vld [vmem:[%s4031_s1 + $0x8] sm:$0xff]  ;;  %v13_v3 = vld [vmem:[%s4031_s1 + $0x10] sm:$0xff]  ;;  %2561 = vmatprep.mubr.msk.f32.mxu0 %vm3475_vm0, %v3476_v4  ;;  %vm98_vm2 = vcmask 517120  }
   0x2   :  { %v3504_v5 = vpack.c.bf16 %v12_v2, %v11_v1  ;;  %v14_v6 = vld [vmem:[%s4031_s1 + $0x18] sm:$0xff]  ;;  %3089 = vmatprep.subr.bf16.mxu1 %v3474_v0  ;;  %2580 = vmatprep.mubr.msk.f32.mxu1 %vm3475_vm0, %v3476_v4  ;;  %v19_v7 = vld [vmem:[%s4032_s0] sm:$0x3]  ;;  %v16_v10 = vld [vmem:[%s4031_s1 + $0x28] sm:$0xff] }
   0x3   :  { %v3516_v8 = vpack.c.bf16 %v14_v6, %v13_v3  ;;  %v15_v9 = vld [vmem:[%s4031_s1 + $0x20] sm:$0xff]  ;;  %3416 = vtanh.f32 %v19_v7  ;;  %v17_v12 = vld [vmem:[%s4031_s1 + $0x30] sm:$0xff]  ;;  %v18_v13 = vld [vmem:[%s4031_s1 + $0x38] sm:$0xff] }
   0x4   :  { %3079 = vmatpush3.bf16.msra.mxu0 %v3504_v5  ;;  %3091 = vmatpush3.bf16.msra.mxu1 %v3504_v5  ;;  %v3528_v11 = vpack.c.bf16 %v16_v10, %v15_v9  ;;  %v3540_v14 = vpack.c.bf16 %v18_v13, %v17_v12  ;;  %v2210_v16 = vld [vmem:[%s4032_s0 + $0x2] sm:$0x3]  ;;  %v2212_v21 = vld [vmem:[%s4032_s0 + $0x4] sm:$0x3]  ;;  %v2215_v26 = vld [vmem:[%s4032_s0 + $0x6] sm:$0x3] }
   0x5   :  { %3080 = vmatprep.subr.bf16.mxu0 %v3474_v0  ;;  %3092 = vmatprep.subr.bf16.mxu1 %v3474_v0  ;;  %v2218_v31 = vld [vmem:[%s4032_s0 + $0x8] sm:$0x3]  ;;  %v2221_v36 = vld [vmem:[%s4032_s0 + $0xa] sm:$0x3]  ;;  %v2224_v41 = vld [vmem:[%s4032_s0 + $0xc] sm:$0x3] }
   0x6   :  { %v2227_v46 = vld [vmem:[%s4032_s0 + $0xe] sm:$0x3]  ;;  %v2230_v51 = vld [vmem:[%s4032_s0 + $0x10] sm:$0x3]  ;;  %v2233_v56 = vld [vmem:[%s4032_s0 + $0x12] sm:$0x3] }
   0x7   :  { %v2236_v61 = vld [vmem:[%s4032_s0 + $0x14] sm:$0x3]  ;;  %v2239_v3 = vld [vmem:[%s4032_s0 + $0x16] sm:$0x3]  ;;  %v2242_v12 = vld [vmem:[%s4032_s0 + $0x18] sm:$0x3] }
   0x8   :  { %3082 = vmatpush3.bf16.msra.mxu0 %v3516_v8  ;;  %3094 = vmatpush3.bf16.msra.mxu1 %v3516_v8 }
   0x9   :  { %3083 = vmatprep.subr.bf16.mxu0 %v3474_v0  ;;  %3095 = vmatprep.subr.bf16.mxu1 %v3474_v0 }
   0xc   :  { %3085 = vmatpush3.bf16.msra.mxu0 %v3528_v11  ;;  %3097 = vmatpush3.bf16.msra.mxu1 %v3528_v11 }
   0xd   :  { %3086 = vmatprep.subr.bf16.mxu0 %v3474_v0  ;;  %3098 = vmatprep.subr.bf16.mxu1 %v3474_v0  ;;  %v3417_v15 = vpop.eup %3416 }
  0x10   :  { %3088 = vmatpush3.bf16.msra.mxu0 %v3540_v14  ;;  %3100 = vmatpush3.bf16.msra.mxu1 %v3540_v14 }
  0x11   :  { %3101 = vmatprep.subr.bf16.mxu0 %v3474_v0  ;;  %3113 = vmatprep.subr.bf16.mxu1 %v3474_v0 }
  0x13   :  { %2562 = vmatmul.mubr.msk.f32.vlgmr.msra.gmra.mrb[0].mxu0 %vm23_vm1, %v3417_v15 }
  0x14   :  { %3103 = vmatpush3.bf16.msra.mxu0 %v3504_v5  ;;  %2599 = vmatprep.mubr.msk.f32.mxu0 %vm3475_vm0, %v3476_v4 }
  0x15   :  { %3104 = vmatprep.subr.bf16.mxu0 %v3474_v0 }
  0x18   :  { %3106 = vmatpush3.bf16.msra.mxu0 %v3516_v8 }
  0x19   :  { %3107 = vmatprep.subr.bf16.mxu0 %v3474_v0 }
  0x1c   :  { %3109 = vmatpush3.bf16.msra.mxu0 %v3528_v11 }
  0x1d   :  { %3110 = vmatprep.subr.bf16.mxu0 %v3474_v0 }
  0x20   :  { %3112 = vmatpush3.bf16.msra.mxu0 %v3540_v14 }
  0x21   :  { %3125 = vmatprep.subr.bf16.mxu0 %v3474_v0 }
  0xe6   :  { %v93_v17 = vpop.f32.mrb[0].mxu0 }
  0xe7   :  { %v94_v18 = vadd.f32 %v2210_v16, %v93_v17  ;;  %v2563_v19 = vpop.f32.mrb[1].mxu0 }
  0xe9   :  { %3418 = vtanh.f32 %v94_v18  ;;  %v2245_v18 = vld [vmem:[%s4032_s0 + $0x1a] sm:$0x3] }
  0xf3   :  { %v3419_v20 = vpop.eup %3418 }
  0xf4   :  { %99 = vst.msk [vmem:[%s4033_s2] sm:$0x3] %vm98_vm2, %v3419_v20  ;;  %2581 = vmatmul.mubr.msk.f32.vlgmr.msra.gmra.mrb[0].mxu1 %vm23_vm1, %v3419_v20 }
  0xf5   :  { %3115 = vmatpush3.bf16.msra.mxu1 %v3504_v5  ;;  %2618 = vmatprep.mubr.msk.f32.mxu1 %vm3475_vm0, %v3476_v4 }
  0xf6   :  { %3116 = vmatprep.subr.bf16.mxu1 %v3474_v0 }
  0xf9   :  { %3118 = vmatpush3.bf16.msra.mxu1 %v3516_v8 }
  0xfa   :  { %3119 = vmatprep.subr.bf16.mxu1 %v3474_v0 }
  0xfd   :  { %3121 = vmatpush3.bf16.msra.mxu1 %v3528_v11 }
  0xfe   :  { %3122 = vmatprep.subr.bf16.mxu1 %v3474_v0 }
 0x101   :  { %3124 = vmatpush3.bf16.msra.mxu1 %v3540_v14 }
 0x102   :  { %3137 = vmatprep.subr.bf16.mxu1 %v3474_v0 }
 0x1c7   :  { %v171_v22 = vpop.f32.mrb[0].mxu1 }
 0x1c8   :  { %v172_v23 = vadd.f32 %v2212_v21, %v171_v22  ;;  %v2582_v24 = vpop.f32.mrb[1].mxu1 }
 0x1ca   :  { %3420 = vtanh.f32 %v172_v23  ;;  %v2248_v23 = vld [vmem:[%s4032_s0 + $0x1c] sm:$0x3] }
 0x1d4   :  { %v3421_v25 = vpop.eup %3420 }
 0x1d5   :  { %2214 = vst.msk [vmem:[%s4033_s2 + $0x2] sm:$0x3] %vm98_vm2, %v3421_v25  ;;  %2600 = vmatmul.mubr.msk.f32.vlgmr.msra.gmra.mrb[2].mxu0 %vm23_vm1, %v3421_v25 }
 0x1d6   :  { %3127 = vmatpush3.bf16.msra.mxu0 %v3504_v5  ;;  %2637 = vmatprep.mubr.msk.f32.mxu0 %vm3475_vm0, %v3476_v4 }
 0x1d7   :  { %3128 = vmatprep.subr.bf16.mxu0 %v3474_v0 }
 0x1da   :  { %3130 = vmatpush3.bf16.msra.mxu0 %v3516_v8 }
 0x1db   :  { %3131 = vmatprep.subr.bf16.mxu0 %v3474_v0 }
 0x1de   :  { %3133 = vmatpush3.bf16.msra.mxu0 %v3528_v11 }
 0x1df   :  { %3134 = vmatprep.subr.bf16.mxu0 %v3474_v0 }
 0x1e2   :  { %3136 = vmatpush3.bf16.msra.mxu0 %v3540_v14 }
 0x1e3   :  { %3149 = vmatprep.subr.bf16.mxu0 %v3474_v0 }
 0x2a8   :  { %v249_v27 = vpop.f32.mrb[2].mxu0 }
 0x2a9   :  { %v250_v28 = vadd.f32 %v2215_v26, %v249_v27  ;;  %v2601_v29 = vpop.f32.mrb[3].mxu0 }
 0x2ab   :  { %3422 = vtanh.f32 %v250_v28  ;;  %v2251_v28 = vld [vmem:[%s4032_s0 + $0x1e] sm:$0x3] }
 0x2b5   :  { %v3423_v30 = vpop.eup %3422 }
 0x2b6   :  { %2217 = vst.msk [vmem:[%s4033_s2 + $0x4] sm:$0x3] %vm98_vm2, %v3423_v30  ;;  %2619 = vmatmul.mubr.msk.f32.vlgmr.msra.gmra.mrb[2].mxu1 %vm23_vm1, %v3423_v30 }
 0x2b7   :  { %3139 = vmatpush3.bf16.msra.mxu1 %v3504_v5  ;;  %2656 = vmatprep.mubr.msk.f32.mxu1 %vm3475_vm0, %v3476_v4 }
 0x2b8   :  { %3140 = vmatprep.subr.bf16.mxu1 %v3474_v0 }
 0x2bb   :  { %3142 = vmatpush3.bf16.msra.mxu1 %v3516_v8 }
 0x2bc   :  { %3143 = vmatprep.subr.bf16.mxu1 %v3474_v0 }
 0x2bf   :  { %3145 = vmatpush3.bf16.msra.mxu1 %v3528_v11 }
 0x2c0   :  { %3146 = vmatprep.subr.bf16.mxu1 %v3474_v0 }
 0x2c3   :  { %3148 = vmatpush3.bf16.msra.mxu1 %v3540_v14 }
 0x2c4   :  { %3161 = vmatprep.subr.bf16.mxu1 %v3474_v0 }
 0x389   :  { %v327_v32 = vpop.f32.mrb[2].mxu1 }
 0x38a   :  { %v328_v33 = vadd.f32 %v2218_v31, %v327_v32  ;;  %v2620_v34 = vpop.f32.mrb[3].mxu1 }
 0x38c   :  { %3424 = vtanh.f32 %v328_v33  ;;  %v2254_v33 = vld [vmem:[%s4032_s0 + $0x20] sm:$0x3] }
 0x396   :  { %v3425_v35 = vpop.eup %3424 }
 0x397   :  { %2220 = vst.msk [vmem:[%s4033_s2 + $0x6] sm:$0x3] %vm98_vm2, %v3425_v35  ;;  %2638 = vmatmul.mubr.msk.f32.vlgmr.msra.gmra.mrb[4].mxu0 %vm23_vm1, %v3425_v35 }
 0x398   :  { %3151 = vmatpush3.bf16.msra.mxu0 %v3504_v5  ;;  %2675 = vmatprep.mubr.msk.f32.mxu0 %vm3475_vm0, %v3476_v4 }
 0x399   :  { %3152 = vmatprep.subr.bf16.mxu0 %v3474_v0 }
 0x39c   :  { %3154 = vmatpush3.bf16.msra.mxu0 %v3516_v8 }
 0x39d   :  { %3155 = vmatprep.subr.bf16.mxu0 %v3474_v0 }
 0x3a0   :  { %3157 = vmatpush3.bf16.msra.mxu0 %v3528_v11 }
 0x3a1   :  { %3158 = vmatprep.subr.bf16.mxu0 %v3474_v0 }
 0x3a4   :  { %3160 = vmatpush3.bf16.msra.mxu0 %v3540_v14 }
 0x3a5   :  { %3173 = vmatprep.subr.bf16.mxu0 %v3474_v0 }
 0x46a   :  { %v405_v37 = vpop.f32.mrb[4].mxu0 }
 0x46b   :  { %v406_v38 = vadd.f32 %v2221_v36, %v405_v37  ;;  %v2639_v39 = vpop.f32.mrb[5].mxu0 }
 0x46d   :  { %3426 = vtanh.f32 %v406_v38  ;;  %v2257_v38 = vld [vmem:[%s4032_s0 + $0x22] sm:$0x3] }
 0x477   :  { %v3427_v40 = vpop.eup %3426 }
 0x478   :  { %2223 = vst.msk [vmem:[%s4033_s2 + $0x8] sm:$0x3] %vm98_vm2, %v3427_v40  ;;  %2657 = vmatmul.mubr.msk.f32.vlgmr.msra.gmra.mrb[4].mxu1 %vm23_vm1, %v3427_v40 }
 0x479   :  { %3163 = vmatpush3.bf16.msra.mxu1 %v3504_v5  ;;  %2694 = vmatprep.mubr.msk.f32.mxu1 %vm3475_vm0, %v3476_v4 }
 0x47a   :  { %3164 = vmatprep.subr.bf16.mxu1 %v3474_v0 }
 0x47d   :  { %3166 = vmatpush3.bf16.msra.mxu1 %v3516_v8 }
 0x47e   :  { %3167 = vmatprep.subr.bf16.mxu1 %v3474_v0 }
 0x481   :  { %3169 = vmatpush3.bf16.msra.mxu1 %v3528_v11 }
 0x482   :  { %3170 = vmatprep.subr.bf16.mxu1 %v3474_v0 }
 0x485   :  { %3172 = vmatpush3.bf16.msra.mxu1 %v3540_v14 }
 0x486   :  { %3185 = vmatprep.subr.bf16.mxu1 %v3474_v0 }
 0x54b   :  { %v483_v42 = vpop.f32.mrb[4].mxu1 }
 0x54c   :  { %v484_v43 = vadd.f32 %v2224_v41, %v483_v42  ;;  %v2658_v44 = vpop.f32.mrb[5].mxu1 }
 0x54e   :  { %3428 = vtanh.f32 %v484_v43  ;;  %v2260_v43 = vld [vmem:[%s4032_s0 + $0x24] sm:$0x3] }
 0x558   :  { %v3429_v45 = vpop.eup %3428 }
 0x559   :  { %2226 = vst.msk [vmem:[%s4033_s2 + $0xa] sm:$0x3] %vm98_vm2, %v3429_v45  ;;  %2676 = vmatmul.mubr.msk.f32.vlgmr.msra.gmra.mrb[6].mxu0 %vm23_vm1, %v3429_v45 }
 0x55a   :  { %3175 = vmatpush3.bf16.msra.mxu0 %v3504_v5  ;;  %2713 = vmatprep.mubr.msk.f32.mxu0 %vm3475_vm0, %v3476_v4 }
 0x55b   :  { %3176 = vmatprep.subr.bf16.mxu0 %v3474_v0 }
 0x55e   :  { %3178 = vmatpush3.bf16.msra.mxu0 %v3516_v8 }
 0x55f   :  { %3179 = vmatprep.subr.bf16.mxu0 %v3474_v0 }
 0x562   :  { %3181 = vmatpush3.bf16.msra.mxu0 %v3528_v11 }
 0x563   :  { %3182 = vmatprep.subr.bf16.mxu0 %v3474_v0 }
 0x566   :  { %3184 = vmatpush3.bf16.msra.mxu0 %v3540_v14 }
 0x567   :  { %3197 = vmatprep.subr.bf16.mxu0 %v3474_v0 }
 0x62c   :  { %v561_v47 = vpop.f32.mrb[6].mxu0 }
 0x62d   :  { %v562_v48 = vadd.f32 %v2227_v46, %v561_v47  ;;  %v2677_v49 = vpop.f32.mrb[7].mxu0 }
 0x62f   :  { %3430 = vtanh.f32 %v562_v48  ;;  %v2263_v48 = vld [vmem:[%s4032_s0 + $0x26] sm:$0x3] }
 0x639   :  { %v3431_v50 = vpop.eup %3430 }
 0x63a   :  { %2229 = vst.msk [vmem:[%s4033_s2 + $0xc] sm:$0x3] %vm98_vm2, %v3431_v50  ;;  %2695 = vmatmul.mubr.msk.f32.vlgmr.msra.gmra.mrb[6].mxu1 %vm23_vm1, %v3431_v50 }
 0x63b   :  { %3187 = vmatpush3.bf16.msra.mxu1 %v3504_v5  ;;  %2732 = vmatprep.mubr.msk.f32.mxu1 %vm3475_vm0, %v3476_v4 }
 0x63c   :  { %3188 = vmatprep.subr.bf16.mxu1 %v3474_v0 }
 0x63f   :  { %3190 = vmatpush3.bf16.msra.mxu1 %v3516_v8 }
 0x640   :  { %3191 = vmatprep.subr.bf16.mxu1 %v3474_v0 }
 0x643   :  { %3193 = vmatpush3.bf16.msra.mxu1 %v3528_v11 }
 0x644   :  { %3194 = vmatprep.subr.bf16.mxu1 %v3474_v0 }
 0x647   :  { %3196 = vmatpush3.bf16.msra.mxu1 %v3540_v14 }
 0x648   :  { %3209 = vmatprep.subr.bf16.mxu1 %v3474_v0 }
 0x70d   :  { %v639_v52 = vpop.f32.mrb[6].mxu1 }
 0x70e   :  { %v640_v53 = vadd.f32 %v2230_v51, %v639_v52  ;;  %v2696_v54 = vpop.f32.mrb[7].mxu1 }
 0x710   :  { %3432 = vtanh.f32 %v640_v53  ;;  %v2266_v53 = vld [vmem:[%s4032_s0 + $0x28] sm:$0x3] }
 0x71a   :  { %v3433_v55 = vpop.eup %3432 }
 0x71b   :  { %2232 = vst.msk [vmem:[%s4033_s2 + $0xe] sm:$0x3] %vm98_vm2, %v3433_v55  ;;  %2714 = vmatmul.mubr.msk.f32.vlgmr.msra.gmra.mrb[8].mxu0 %vm23_vm1, %v3433_v55 }
 0x71c   :  { %3199 = vmatpush3.bf16.msra.mxu0 %v3504_v5  ;;  %2751 = vmatprep.mubr.msk.f32.mxu0 %vm3475_vm0, %v3476_v4 }
 0x71d   :  { %3200 = vmatprep.subr.bf16.mxu0 %v3474_v0 }
 0x720   :  { %3202 = vmatpush3.bf16.msra.mxu0 %v3516_v8 }
 0x721   :  { %3203 = vmatprep.subr.bf16.mxu0 %v3474_v0 }
 0x724   :  { %3205 = vmatpush3.bf16.msra.mxu0 %v3528_v11 }
 0x725   :  { %3206 = vmatprep.subr.bf16.mxu0 %v3474_v0 }
 0x728   :  { %3208 = vmatpush3.bf16.msra.mxu0 %v3540_v14 }
 0x729   :  { %3221 = vmatprep.subr.bf16.mxu0 %v3474_v0 }
 0x7ee   :  { %v717_v57 = vpop.f32.mrb[8].mxu0 }
 0x7ef   :  { %v718_v58 = vadd.f32 %v2233_v56, %v717_v57  ;;  %v2715_v59 = vpop.f32.mrb[9].mxu0 }
 0x7f1   :  { %3434 = vtanh.f32 %v718_v58  ;;  %v2269_v58 = vld [vmem:[%s4032_s0 + $0x2a] sm:$0x3] }
 0x7fb   :  { %v3435_v60 = vpop.eup %3434 }
 0x7fc   :  { %2235 = vst.msk [vmem:[%s4033_s2 + $0x10] sm:$0x3] %vm98_vm2, %v3435_v60  ;;  %2733 = vmatmul.mubr.msk.f32.vlgmr.msra.gmra.mrb[8].mxu1 %vm23_vm1, %v3435_v60 }
 0x7fd   :  { %3211 = vmatpush3.bf16.msra.mxu1 %v3504_v5  ;;  %2770 = vmatprep.mubr.msk.f32.mxu1 %vm3475_vm0, %v3476_v4 }
 0x7fe   :  { %3212 = vmatprep.subr.bf16.mxu1 %v3474_v0 }
 0x801   :  { %3214 = vmatpush3.bf16.msra.mxu1 %v3516_v8 }
 0x802   :  { %3215 = vmatprep.subr.bf16.mxu1 %v3474_v0 }
 0x805   :  { %3217 = vmatpush3.bf16.msra.mxu1 %v3528_v11 }
 0x806   :  { %3218 = vmatprep.subr.bf16.mxu1 %v3474_v0 }
 0x809   :  { %3220 = vmatpush3.bf16.msra.mxu1 %v3540_v14 }
 0x80a   :  { %3233 = vmatprep.subr.bf16.mxu1 %v3474_v0 }
 0x8cf   :  { %v795_v62 = vpop.f32.mrb[8].mxu1 }
 0x8d0   :  { %v796_v63 = vadd.f32 %v2236_v61, %v795_v62  ;;  %v2734_v1 = vpop.f32.mrb[9].mxu1 }
 0x8d2   :  { %3436 = vtanh.f32 %v796_v63  ;;  %v2272_v63 = vld [vmem:[%s4032_s0 + $0x2c] sm:$0x3] }
 0x8dc   :  { %v3437_v2 = vpop.eup %3436 }
 0x8dd   :  { %2238 = vst.msk [vmem:[%s4033_s2 + $0x12] sm:$0x3] %vm98_vm2, %v3437_v2  ;;  %2752 = vmatmul.mubr.msk.f32.vlgmr.msra.gmra.mrb[10].mxu0 %vm23_vm1, %v3437_v2 }
 0x8de   :  { %3223 = vmatpush3.bf16.msra.mxu0 %v3504_v5  ;;  %2789 = vmatprep.mubr.msk.f32.mxu0 %vm3475_vm0, %v3476_v4 }
 0x8df   :  { %3224 = vmatprep.subr.bf16.mxu0 %v3474_v0 }
 0x8e2   :  { %3226 = vmatpush3.bf16.msra.mxu0 %v3516_v8 }
 0x8e3   :  { %3227 = vmatprep.subr.bf16.mxu0 %v3474_v0 }
 0x8e6   :  { %3229 = vmatpush3.bf16.msra.mxu0 %v3528_v11 }
 0x8e7   :  { %3230 = vmatprep.subr.bf16.mxu0 %v3474_v0 }
 0x8ea   :  { %3232 = vmatpush3.bf16.msra.mxu0 %v3540_v14 }
 0x8eb   :  { %3245 = vmatprep.subr.bf16.mxu0 %v3474_v0 }
 0x9b0   :  { %v873_v6 = vpop.f32.mrb[10].mxu0 }
 0x9b1   :  { %v874_v7 = vadd.f32 %v2239_v3, %v873_v6  ;;  %v2753_v9 = vpop.f32.mrb[11].mxu0 }
 0x9b3   :  { %3438 = vtanh.f32 %v874_v7  ;;  %v2275_v7 = vld [vmem:[%s4032_s0 + $0x2e] sm:$0x3] }
 0x9bd   :  { %v3439_v10 = vpop.eup %3438 }
 0x9be   :  { %2241 = vst.msk [vmem:[%s4033_s2 + $0x14] sm:$0x3] %vm98_vm2, %v3439_v10  ;;  %2771 = vmatmul.mubr.msk.f32.vlgmr.msra.gmra.mrb[10].mxu1 %vm23_vm1, %v3439_v10 }
 0x9bf   :  { %3235 = vmatpush3.bf16.msra.mxu1 %v3504_v5  ;;  %2808 = vmatprep.mubr.msk.f32.mxu1 %vm3475_vm0, %v3476_v4 }
 0x9c0   :  { %3236 = vmatprep.subr.bf16.mxu1 %v3474_v0 }
 0x9c3   :  { %3238 = vmatpush3.bf16.msra.mxu1 %v3516_v8 }
 0x9c4   :  { %3239 = vmatprep.subr.bf16.mxu1 %v3474_v0 }
 0x9c7   :  { %3241 = vmatpush3.bf16.msra.mxu1 %v3528_v11 }
 0x9c8   :  { %3242 = vmatprep.subr.bf16.mxu1 %v3474_v0 }
 0x9cb   :  { %3244 = vmatpush3.bf16.msra.mxu1 %v3540_v14 }
 0x9cc   :  { %3257 = vmatprep.subr.bf16.mxu1 %v3474_v0 }
 0xa91   :  { %v951_v13 = vpop.f32.mrb[10].mxu1 }
 0xa92   :  { %v952_v15 = vadd.f32 %v2242_v12, %v951_v13  ;;  %v2772_v16 = vpop.f32.mrb[11].mxu1 }
 0xa94   :  { %3440 = vtanh.f32 %v952_v15  ;;  %v2278_v15 = vld [vmem:[%s4032_s0 + $0x30] sm:$0x3] }
 0xa9e   :  { %v3441_v17 = vpop.eup %3440 }
 0xa9f   :  { %2244 = vst.msk [vmem:[%s4033_s2 + $0x16] sm:$0x3] %vm98_vm2, %v3441_v17  ;;  %2790 = vmatmul.mubr.msk.f32.vlgmr.msra.gmra.mrb[12].mxu0 %vm23_vm1, %v3441_v17 }
 0xaa0   :  { %3247 = vmatpush3.bf16.msra.mxu0 %v3504_v5  ;;  %2827 = vmatprep.mubr.msk.f32.mxu0 %vm3475_vm0, %v3476_v4 }
 0xaa1   :  { %3248 = vmatprep.subr.bf16.mxu0 %v3474_v0 }
 0xaa4   :  { %3250 = vmatpush3.bf16.msra.mxu0 %v3516_v8 }
 0xaa5   :  { %3251 = vmatprep.subr.bf16.mxu0 %v3474_v0 }
 0xaa8   :  { %3253 = vmatpush3.bf16.msra.mxu0 %v3528_v11 }
 0xaa9   :  { %3254 = vmatprep.subr.bf16.mxu0 %v3474_v0 }
 0xaac   :  { %3256 = vmatpush3.bf16.msra.mxu0 %v3540_v14 }
 0xaad   :  { %3269 = vmatprep.subr.bf16.mxu0 %v3474_v0 }
 0xb72   :  { %v1029_v19 = vpop.f32.mrb[12].mxu0 }
 0xb73   :  { %v1030_v20 = vadd.f32 %v2245_v18, %v1029_v19  ;;  %v2791_v21 = vpop.f32.mrb[13].mxu0 }
 0xb75   :  { %3442 = vtanh.f32 %v1030_v20  ;;  %v2281_v20 = vld [vmem:[%s4032_s0 + $0x32] sm:$0x3] }
 0xb7f   :  { %v3443_v22 = vpop.eup %3442 }
 0xb80   :  { %2247 = vst.msk [vmem:[%s4033_s2 + $0x18] sm:$0x3] %vm98_vm2, %v3443_v22  ;;  %2809 = vmatmul.mubr.msk.f32.vlgmr.msra.gmra.mrb[12].mxu1 %vm23_vm1, %v3443_v22 }
 0xb81   :  { %3259 = vmatpush3.bf16.msra.mxu1 %v3504_v5  ;;  %2846 = vmatprep.mubr.msk.f32.mxu1 %vm3475_vm0, %v3476_v4 }
 0xb82   :  { %3260 = vmatprep.subr.bf16.mxu1 %v3474_v0 }
 0xb85   :  { %3262 = vmatpush3.bf16.msra.mxu1 %v3516_v8 }
 0xb86   :  { %3263 = vmatprep.subr.bf16.mxu1 %v3474_v0 }
 0xb89   :  { %3265 = vmatpush3.bf16.msra.mxu1 %v3528_v11 }
 0xb8a   :  { %3266 = vmatprep.subr.bf16.mxu1 %v3474_v0 }
 0xb8d   :  { %3268 = vmatpush3.bf16.msra.mxu1 %v3540_v14 }
 0xb8e   :  { %3281 = vmatprep.subr.bf16.mxu1 %v3474_v0 }
 0xc53   :  { %v1107_v24 = vpop.f32.mrb[12].mxu1 }
 0xc54   :  { %v1108_v25 = vadd.f32 %v2248_v23, %v1107_v24  ;;  %v2810_v26 = vpop.f32.mrb[13].mxu1 }
 0xc56   :  { %3444 = vtanh.f32 %v1108_v25  ;;  %v2284_v25 = vld [vmem:[%s4032_s0 + $0x34] sm:$0x3] }
 0xc60   :  { %v3445_v27 = vpop.eup %3444 }
 0xc61   :  { %2250 = vst.msk [vmem:[%s4033_s2 + $0x1a] sm:$0x3] %vm98_vm2, %v3445_v27  ;;  %2828 = vmatmul.mubr.msk.f32.vlgmr.msra.gmra.mrb[14].mxu0 %vm23_vm1, %v3445_v27 }
 0xc62   :  { %3271 = vmatpush3.bf16.msra.mxu0 %v3504_v5  ;;  %2865 = vmatprep.mubr.msk.f32.mxu0 %vm3475_vm0, %v3476_v4 }
 0xc63   :  { %3272 = vmatprep.subr.bf16.mxu0 %v3474_v0 }
 0xc66   :  { %3274 = vmatpush3.bf16.msra.mxu0 %v3516_v8 }
 0xc67   :  { %3275 = vmatprep.subr.bf16.mxu0 %v3474_v0 }
 0xc6a   :  { %3277 = vmatpush3.bf16.msra.mxu0 %v3528_v11 }
 0xc6b   :  { %3278 = vmatprep.subr.bf16.mxu0 %v3474_v0 }
 0xc6e   :  { %3280 = vmatpush3.bf16.msra.mxu0 %v3540_v14 }
 0xc6f   :  { %3293 = vmatprep.subr.bf16.mxu0 %v3474_v0 }
 0xd34   :  { %v1185_v29 = vpop.f32.mrb[14].mxu0 }
 0xd35   :  { %v1186_v30 = vadd.f32 %v2251_v28, %v1185_v29  ;;  %v2829_v31 = vpop.f32.mrb[15].mxu0  ;;  %v2290_v29 = vld [vmem:[%s4032_s0 + $0x38] sm:$0x3] }
 0xd37   :  { %3446 = vtanh.f32 %v1186_v30 }
 0xd41   :  { %v3447_v32 = vpop.eup %3446 }
 0xd42   :  { %2253 = vst.msk [vmem:[%s4033_s2 + $0x1c] sm:$0x3] %vm98_vm2, %v3447_v32  ;;  %2847 = vmatmul.mubr.msk.f32.vlgmr.msra.gmra.mrb[14].mxu1 %vm23_vm1, %v3447_v32 }
 0xd43   :  { %3283 = vmatpush3.bf16.msra.mxu1 %v3504_v5  ;;  %2884 = vmatprep.mubr.msk.f32.mxu1 %vm3475_vm0, %v3476_v4 }
 0xd44   :  { %3284 = vmatprep.subr.bf16.mxu1 %v3474_v0 }
 0xd47   :  { %3286 = vmatpush3.bf16.msra.mxu1 %v3516_v8 }
 0xd48   :  { %3287 = vmatprep.subr.bf16.mxu1 %v3474_v0 }
 0xd4b   :  { %3289 = vmatpush3.bf16.msra.mxu1 %v3528_v11 }
 0xd4c   :  { %3290 = vmatprep.subr.bf16.mxu1 %v3474_v0 }
 0xd4f   :  { %3292 = vmatpush3.bf16.msra.mxu1 %v3540_v14 }
 0xd50   :  { %3305 = vmatprep.subr.bf16.mxu1 %v3474_v0 }
 0xe15   :  { %v1263_v34 = vpop.f32.mrb[14].mxu1 }
 0xe16   :  { %v1264_v35 = vadd.f32 %v2254_v33, %v1263_v34  ;;  %v2848_v36 = vpop.f32.mrb[15].mxu1 }
 0xe18   :  { %3448 = vtanh.f32 %v1264_v35 }
 0xe22   :  { %v3449_v37 = vpop.eup %3448 }
 0xe23   :  { %2256 = vst.msk [vmem:[%s4033_s2 + $0x1e] sm:$0x3] %vm98_vm2, %v3449_v37  ;;  %2866 = vmatmul.mubr.msk.f32.vlgmr.msra.gmra.mrb[16].mxu0 %vm23_vm1, %v3449_v37 }
 0xe24   :  { %3295 = vmatpush3.bf16.msra.mxu0 %v3504_v5  ;;  %2903 = vmatprep.mubr.msk.f32.mxu0 %vm3475_vm0, %v3476_v4 }
 0xe25   :  { %3296 = vmatprep.subr.bf16.mxu0 %v3474_v0 }
 0xe28   :  { %3298 = vmatpush3.bf16.msra.mxu0 %v3516_v8 }
 0xe29   :  { %3299 = vmatprep.subr.bf16.mxu0 %v3474_v0 }
 0xe2c   :  { %3301 = vmatpush3.bf16.msra.mxu0 %v3528_v11 }
 0xe2d   :  { %3302 = vmatprep.subr.bf16.mxu0 %v3474_v0 }
 0xe30   :  { %3304 = vmatpush3.bf16.msra.mxu0 %v3540_v14 }
 0xe31   :  { %3317 = vmatprep.subr.bf16.mxu0 %v3474_v0 }
 0xef6   :  { %v1341_v39 = vpop.f32.mrb[16].mxu0 }
 0xef7   :  { %v1342_v40 = vadd.f32 %v2257_v38, %v1341_v39  ;;  %v2867_v41 = vpop.f32.mrb[17].mxu0 }
 0xef9   :  { %3450 = vtanh.f32 %v1342_v40 }
 0xf03   :  { %v3451_v42 = vpop.eup %3450 }
 0xf04   :  { %2259 = vst.msk [vmem:[%s4033_s2 + $0x20] sm:$0x3] %vm98_vm2, %v3451_v42  ;;  %2885 = vmatmul.mubr.msk.f32.vlgmr.msra.gmra.mrb[16].mxu1 %vm23_vm1, %v3451_v42 }
 0xf05   :  { %3307 = vmatpush3.bf16.msra.mxu1 %v3504_v5  ;;  %2922 = vmatprep.mubr.msk.f32.mxu1 %vm3475_vm0, %v3476_v4 }
 0xf06   :  { %3308 = vmatprep.subr.bf16.mxu1 %v3474_v0 }
 0xf09   :  { %3310 = vmatpush3.bf16.msra.mxu1 %v3516_v8 }
 0xf0a   :  { %3311 = vmatprep.subr.bf16.mxu1 %v3474_v0 }
 0xf0d   :  { %3313 = vmatpush3.bf16.msra.mxu1 %v3528_v11 }
 0xf0e   :  { %3314 = vmatprep.subr.bf16.mxu1 %v3474_v0 }
 0xf11   :  { %3316 = vmatpush3.bf16.msra.mxu1 %v3540_v14 }
 0xf12   :  { %3329 = vmatprep.subr.bf16.mxu1 %v3474_v0 }
 0xfd7   :  { %v1419_v44 = vpop.f32.mrb[16].mxu1 }
 0xfd8   :  { %v1420_v45 = vadd.f32 %v2260_v43, %v1419_v44  ;;  %v2886_v46 = vpop.f32.mrb[17].mxu1 }
 0xfda   :  { %3452 = vtanh.f32 %v1420_v45 }
 0xfe4   :  { %v3453_v47 = vpop.eup %3452 }
 0xfe5   :  { %2262 = vst.msk [vmem:[%s4033_s2 + $0x22] sm:$0x3] %vm98_vm2, %v3453_v47  ;;  %2904 = vmatmul.mubr.msk.f32.vlgmr.msra.gmra.mrb[18].mxu0 %vm23_vm1, %v3453_v47 }
 0xfe6   :  { %3319 = vmatpush3.bf16.msra.mxu0 %v3504_v5  ;;  %2941 = vmatprep.mubr.msk.f32.mxu0 %vm3475_vm0, %v3476_v4 }
 0xfe7   :  { %3320 = vmatprep.subr.bf16.mxu0 %v3474_v0 }
 0xfea   :  { %3322 = vmatpush3.bf16.msra.mxu0 %v3516_v8 }
 0xfeb   :  { %3323 = vmatprep.subr.bf16.mxu0 %v3474_v0 }
 0xfee   :  { %3325 = vmatpush3.bf16.msra.mxu0 %v3528_v11 }
 0xfef   :  { %3326 = vmatprep.subr.bf16.mxu0 %v3474_v0 }
 0xff2   :  { %3328 = vmatpush3.bf16.msra.mxu0 %v3540_v14 }
 0xff3   :  { %3341 = vmatprep.subr.bf16.mxu0 %v3474_v0 }
0x10b8   :  { %v1497_v49 = vpop.f32.mrb[18].mxu0 }
0x10b9   :  { %v1498_v50 = vadd.f32 %v2263_v48, %v1497_v49  ;;  %v2905_v51 = vpop.f32.mrb[19].mxu0 }
0x10bb   :  { %3454 = vtanh.f32 %v1498_v50 }
0x10c5   :  { %v3455_v52 = vpop.eup %3454 }
0x10c6   :  { %2265 = vst.msk [vmem:[%s4033_s2 + $0x24] sm:$0x3] %vm98_vm2, %v3455_v52  ;;  %2923 = vmatmul.mubr.msk.f32.vlgmr.msra.gmra.mrb[18].mxu1 %vm23_vm1, %v3455_v52 }
0x10c7   :  { %3331 = vmatpush3.bf16.msra.mxu1 %v3504_v5  ;;  %2960 = vmatprep.mubr.msk.f32.mxu1 %vm3475_vm0, %v3476_v4 }
0x10c8   :  { %3332 = vmatprep.subr.bf16.mxu1 %v3474_v0 }
0x10cb   :  { %3334 = vmatpush3.bf16.msra.mxu1 %v3516_v8 }
0x10cc   :  { %3335 = vmatprep.subr.bf16.mxu1 %v3474_v0 }
0x10cf   :  { %3337 = vmatpush3.bf16.msra.mxu1 %v3528_v11 }
0x10d0   :  { %3338 = vmatprep.subr.bf16.mxu1 %v3474_v0 }
0x10d3   :  { %3340 = vmatpush3.bf16.msra.mxu1 %v3540_v14 }
0x10d4   :  { %3353 = vmatprep.subr.bf16.mxu1 %v3474_v0 }
0x1199   :  { %v1575_v54 = vpop.f32.mrb[18].mxu1 }
0x119a   :  { %v1576_v55 = vadd.f32 %v2266_v53, %v1575_v54  ;;  %v2924_v56 = vpop.f32.mrb[19].mxu1 }
0x119c   :  { %3456 = vtanh.f32 %v1576_v55 }
0x11a6   :  { %v3457_v57 = vpop.eup %3456 }
0x11a7   :  { %2268 = vst.msk [vmem:[%s4033_s2 + $0x26] sm:$0x3] %vm98_vm2, %v3457_v57  ;;  %2942 = vmatmul.mubr.msk.f32.vlgmr.msra.gmra.mrb[20].mxu0 %vm23_vm1, %v3457_v57 }
0x11a8   :  { %3343 = vmatpush3.bf16.msra.mxu0 %v3504_v5  ;;  %2979 = vmatprep.mubr.msk.f32.mxu0 %vm3475_vm0, %v3476_v4 }
0x11a9   :  { %3344 = vmatprep.subr.bf16.mxu0 %v3474_v0 }
0x11ac   :  { %3346 = vmatpush3.bf16.msra.mxu0 %v3516_v8 }
0x11ad   :  { %3347 = vmatprep.subr.bf16.mxu0 %v3474_v0 }
0x11b0   :  { %3349 = vmatpush3.bf16.msra.mxu0 %v3528_v11 }
0x11b1   :  { %3350 = vmatprep.subr.bf16.mxu0 %v3474_v0 }
0x11b4   :  { %3352 = vmatpush3.bf16.msra.mxu0 %v3540_v14 }
0x11b5   :  { %3365 = vmatprep.subr.bf16.mxu0 %v3474_v0 }
0x127a   :  { %v1653_v59 = vpop.f32.mrb[20].mxu0 }
0x127b   :  { %v1654_v60 = vadd.f32 %v2269_v58, %v1653_v59  ;;  %v2943_v61 = vpop.f32.mrb[21].mxu0 }
0x127d   :  { %3458 = vtanh.f32 %v1654_v60 }
0x1287   :  { %v3459_v62 = vpop.eup %3458 }
0x1288   :  { %2271 = vst.msk [vmem:[%s4033_s2 + $0x28] sm:$0x3] %vm98_vm2, %v3459_v62  ;;  %2961 = vmatmul.mubr.msk.f32.vlgmr.msra.gmra.mrb[20].mxu1 %vm23_vm1, %v3459_v62 }
0x1289   :  { %3355 = vmatpush3.bf16.msra.mxu1 %v3504_v5  ;;  %2998 = vmatprep.mubr.msk.f32.mxu1 %vm3475_vm0, %v3476_v4 }
0x128a   :  { %3356 = vmatprep.subr.bf16.mxu1 %v3474_v0 }
0x128d   :  { %3358 = vmatpush3.bf16.msra.mxu1 %v3516_v8 }
0x128e   :  { %3359 = vmatprep.subr.bf16.mxu1 %v3474_v0 }
0x1291   :  { %3361 = vmatpush3.bf16.msra.mxu1 %v3528_v11 }
0x1292   :  { %3362 = vmatprep.subr.bf16.mxu1 %v3474_v0 }
0x1295   :  { %3364 = vmatpush3.bf16.msra.mxu1 %v3540_v14 }
0x1296   :  { %3377 = vmatprep.subr.bf16.mxu1 %v3474_v0 }
0x135b   :  { %v1731_v1 = vpop.f32.mrb[20].mxu1 }
0x135c   :  { %v1732_v2 = vadd.f32 %v2272_v63, %v1731_v1  ;;  %v2962_v3 = vpop.f32.mrb[21].mxu1 }
0x135e   :  { %3460 = vtanh.f32 %v1732_v2 }
0x1368   :  { %v3461_v6 = vpop.eup %3460 }
0x1369   :  { %2274 = vst.msk [vmem:[%s4033_s2 + $0x2a] sm:$0x3] %vm98_vm2, %v3461_v6  ;;  %2980 = vmatmul.mubr.msk.f32.vlgmr.msra.gmra.mrb[22].mxu0 %vm23_vm1, %v3461_v6 }
0x136a   :  { %3367 = vmatpush3.bf16.msra.mxu0 %v3504_v5  ;;  %3017 = vmatprep.mubr.msk.f32.mxu0 %vm3475_vm0, %v3476_v4 }
0x136b   :  { %3368 = vmatprep.subr.bf16.mxu0 %v3474_v0 }
0x136e   :  { %3370 = vmatpush3.bf16.msra.mxu0 %v3516_v8 }
0x136f   :  { %3371 = vmatprep.subr.bf16.mxu0 %v3474_v0 }
0x1372   :  { %3373 = vmatpush3.bf16.msra.mxu0 %v3528_v11 }
0x1373   :  { %3374 = vmatprep.subr.bf16.mxu0 %v3474_v0 }
0x1376   :  { %3376 = vmatpush3.bf16.msra.mxu0 %v3540_v14 }
0x1377   :  { %3389 = vmatprep.subr.bf16.mxu0 %v3474_v0 }
0x143c   :  { %v1809_v9 = vpop.f32.mrb[22].mxu0 }
0x143d   :  { %v1810_v10 = vadd.f32 %v2275_v7, %v1809_v9  ;;  %v2981_v12 = vpop.f32.mrb[23].mxu0 }
0x143f   :  { %3462 = vtanh.f32 %v1810_v10 }
0x1449   :  { %v3463_v13 = vpop.eup %3462 }
0x144a   :  { %2277 = vst.msk [vmem:[%s4033_s2 + $0x2c] sm:$0x3] %vm98_vm2, %v3463_v13  ;;  %2999 = vmatmul.mubr.msk.f32.vlgmr.msra.gmra.mrb[22].mxu1 %vm23_vm1, %v3463_v13 }
0x144b   :  { %3379 = vmatpush3.bf16.msra.mxu1 %v3504_v5  ;;  %3036 = vmatprep.mubr.msk.f32.mxu1 %vm3475_vm0, %v3476_v4 }
0x144c   :  { %3380 = vmatprep.subr.bf16.mxu1 %v3474_v0 }
0x144f   :  { %3382 = vmatpush3.bf16.msra.mxu1 %v3516_v8 }
0x1450   :  { %3383 = vmatprep.subr.bf16.mxu1 %v3474_v0 }
0x1453   :  { %3385 = vmatpush3.bf16.msra.mxu1 %v3528_v11 }
0x1454   :  { %3386 = vmatprep.subr.bf16.mxu1 %v3474_v0 }
0x1457   :  { %3388 = vmatpush3.bf16.msra.mxu1 %v3540_v14 }
0x1458   :  { %3401 = vmatprep.subr.bf16.mxu1 %v3474_v0 }
0x151d   :  { %v1887_v16 = vpop.f32.mrb[22].mxu1 }
0x151e   :  { %v1888_v17 = vadd.f32 %v2278_v15, %v1887_v16  ;;  %v3000_v18 = vpop.f32.mrb[23].mxu1 }
0x1520   :  { %3464 = vtanh.f32 %v1888_v17 }
0x152a   :  { %v3465_v19 = vpop.eup %3464 }
0x152b   :  { %2280 = vst.msk [vmem:[%s4033_s2 + $0x2e] sm:$0x3] %vm98_vm2, %v3465_v19  ;;  %3018 = vmatmul.mubr.msk.f32.vlgmr.msra.gmra.mrb[24].mxu0 %vm23_vm1, %v3465_v19 }
0x152c   :  { %3391 = vmatpush3.bf16.msra.mxu0 %v3504_v5  ;;  %3055 = vmatprep.mubr.msk.f32.mxu0 %vm3475_vm0, %v3476_v4 }
0x152d   :  { %3392 = vmatprep.subr.bf16.mxu0 %v3474_v0 }
0x1530   :  { %3394 = vmatpush3.bf16.msra.mxu0 %v3516_v8 }
0x1531   :  { %3395 = vmatprep.subr.bf16.mxu0 %v3474_v0 }
0x1534   :  { %3397 = vmatpush3.bf16.msra.mxu0 %v3528_v11 }
0x1535   :  { %3398 = vmatprep.subr.bf16.mxu0 %v3474_v0 }
0x1538   :  { %3400 = vmatpush3.bf16.msra.mxu0 %v3540_v14 }
0x15fe   :  { %v1965_v21 = vpop.f32.mrb[24].mxu0 }
0x15ff   :  { %v1966_v22 = vadd.f32 %v2281_v20, %v1965_v21  ;;  %v3019_v23 = vpop.f32.mrb[25].mxu0 }
0x1601   :  { %3466 = vtanh.f32 %v1966_v22 }
0x160b   :  { %v3467_v24 = vpop.eup %3466 }
0x160c   :  { %2283 = vst.msk [vmem:[%s4033_s2 + $0x30] sm:$0x3] %vm98_vm2, %v3467_v24  ;;  %3037 = vmatmul.mubr.msk.f32.vlgmr.msra.gmra.mrb[24].mxu1 %vm23_vm1, %v3467_v24 }
0x160d   :  { %3403 = vmatpush3.bf16.msra.mxu1 %v3504_v5  ;;  %3074 = vmatprep.mubr.msk.f32.mxu1 %vm3475_vm0, %v3476_v4 }
0x160e   :  { %3404 = vmatprep.subr.bf16.mxu1 %v3474_v0 }
0x1611   :  { %3406 = vmatpush3.bf16.msra.mxu1 %v3516_v8 }
0x1612   :  { %3407 = vmatprep.subr.bf16.mxu1 %v3474_v0 }
0x1615   :  { %3409 = vmatpush3.bf16.msra.mxu1 %v3528_v11 }
0x1616   :  { %3410 = vmatprep.subr.bf16.mxu1 %v3474_v0  ;;  %v2287_v0 = vld [vmem:[%s4032_s0 + $0x36] sm:$0x3] }
0x1619   :  { %3412 = vmatpush3.bf16.msra.mxu1 %v3540_v14 }
0x16df   :  { %v2043_v5 = vpop.f32.mrb[24].mxu1 }
0x16e0   :  { %v2044_v26 = vadd.f32 %v2284_v25, %v2043_v5  ;;  %v3038_v27 = vpop.f32.mrb[25].mxu1 }
0x16e2   :  { %3468 = vtanh.f32 %v2044_v26 }
0x16ec   :  { %v3469_v4 = vpop.eup %3468 }
0x16ed   :  { %2286 = vst.msk [vmem:[%s4033_s2 + $0x32] sm:$0x3] %vm98_vm2, %v3469_v4  ;;  %3056 = vmatmul.mubr.msk.f32.vlgmr.msra.gmra.mrb[26].mxu0 %vm23_vm1, %v3469_v4 }
0x17c0   :  { %v2121_v8 = vpop.f32.mrb[26].mxu0 }
0x17c1   :  { %v2122_v11 = vadd.f32 %v2287_v0, %v2121_v8  ;;  %v3057_v14 = vpop.f32.mrb[27].mxu0 }
0x17c3   :  { %3470 = vtanh.f32 %v2122_v11 }
0x17cd   :  { %v3471_v28 = vpop.eup %3470 }
0x17ce   :  { %2289 = vst.msk [vmem:[%s4033_s2 + $0x34] sm:$0x3] %vm98_vm2, %v3471_v28  ;;  %3075 = vmatmul.mubr.msk.f32.vlgmr.msra.gmra.mrb[26].mxu1 %vm23_vm1, %v3471_v28 }
0x18a1   :  { %v2199_v30 = vpop.f32.mrb[26].mxu1 }
0x18a2   :  { %v2200_v31 = vadd.f32 %v2290_v29, %v2199_v30  ;;  %v3076_v32 = vpop.f32.mrb[27].mxu1 }
0x18a4   :  { %3472 = vtanh.f32 %v2200_v31 }
0x18ae   :  { %v3473_v33 = vpop.eup %3472 }
0x18af   :  { %2292 = vst.msk [vmem:[%s4033_s2 + $0x36] sm:$0x3] %vm98_vm2, %v3473_v33 }

</bundles_post_ra>
